<compile_context>
chip_gen: v7x
topology: tpu7x:2x2x1
jax: 0.10.0
libtpu: 0.0.40
codegen_flags: <defaults>
</compile_context>

<pallas_src>
import functools

import jax
import jax.numpy as jnp
from jax.experimental import pallas as pl
from jax.experimental.pallas import tpu as pltpu

# ----------------------------- config (small) -------------------------------
VOCAB_SIZE = 100
HIDDEN = 32
NUM_LAYERS = 2
NUM_HEADS = 2
HEAD_DIM = HIDDEN // NUM_HEADS
INTERMEDIATE = 64
MAX_POS = 64
TYPE_VOCAB = 2
LN_EPS = 1e-12
INIT_RANGE = 0.02
QA_PAD = 128            # lane-dense padded width for the QA logits store

BATCH = 2
SEQ = 8

# misc f32 slab row layout (all biases + all LayerNorm params in one operand):
#   row 0: embedding LN gamma          (lanes 0:H)
#   row 1: embedding LN beta           (lanes 0:H)
#   row 2: qa bias                     (lanes 0:QA_PAD)
#   per layer l, base = 3 + l*ROWS_PER_LAYER:
#     base + 3n + c (n=head, c in q,k,v): qkv bias   (lanes 0:HD)
#     base + 3*NH + 0: attn output bias               (lanes 0:H)
#     base + 3*NH + 1: ffn intermediate bias          (lanes 0:I)
#     base + 3*NH + 2: ffn output bias                (lanes 0:H)
#     base + 3*NH + 3..6: ln1_g, ln1_b, ln2_g, ln2_b  (lanes 0:H)
ROWS_PER_LAYER = NUM_HEADS * 3 + 7
MISC_ROWS = 3 + NUM_LAYERS * ROWS_PER_LAYER
MISC_ROWS_PAD = ((MISC_ROWS + 7) // 8) * 8


# ------------------------------ kernel helpers ------------------------------
def _layernorm(x, gamma, beta, eps=LN_EPS):
    # SuperBertLayerNorm: u = mean, s = mean((x-u)^2); rsqrt goes to the EUP.
    inv_n = 1.0 / x.shape[-1]
    u = jnp.sum(x, axis=-1, keepdims=True) * inv_n
    d = x - u
    s = jnp.sum(d * d, axis=-1, keepdims=True) * inv_n
    return d * jax.lax.rsqrt(s + eps) * gamma + beta


def _gelu(x):
    # BERT gelu: x * 0.5 * (1 + erf(x / sqrt(2)))
    return x * 0.5 * (1.0 + jax.lax.erf(x / jnp.sqrt(jnp.float32(2.0))))


# ------------------------------ fused Pallas kernel --------------------------
def bert_fused_kernel(tok_ids_ref, mask_ref, emb_ref, misc_ref,
                      wqkv_ref, wo_ref, w1_ref, w2_ref, qaw_ref,
                      out_ref, *, seq, num_heads, head_dim, num_layers,
                      vocab, type_vocab, intermediate):
    f32 = jnp.float32
    bf16 = jnp.bfloat16
    hidden = num_heads * head_dim
    total = vocab + type_vocab + seq
    rows_per_layer = num_heads * 3 + 7

    # ---- unpack packed int inputs (one sequence per grid step) --------------
    ids = tok_ids_ref[:, 0:1]            # (S, 1) int32
    tok = tok_ids_ref[:, 1:2]            # (S, 1) int32
    add_mask = mask_ref[...]             # (1, S) f32, already (1-m)*-10000

    # ---- embeddings: word + type + pos as a single 3-hot matmul -------------
    col = jax.lax.broadcasted_iota(jnp.int32, (seq, total), 1)
    row = jax.lax.broadcasted_iota(jnp.int32, (seq, total), 0)
    onehot = ((col == ids).astype(f32) +
              (col == tok + vocab).astype(f32) +
              (col == row + vocab + type_vocab).astype(f32))
    emb = jnp.dot(onehot, emb_ref[...], preferred_element_type=f32)   # (S, H)

    def ln_row(r):
        return misc_ref[r:r + 1, 0:hidden]

    h = _layernorm(emb, ln_row(0), ln_row(1))                         # (S, H)

    scale = f32(1.0 / (head_dim ** 0.5))

    # ------------------------------ encoder layers ---------------------------
    for l in range(num_layers):                     # static unrolled loop
        base = 3 + l * rows_per_layer
        ob = base + num_heads * 3
        h_bf = h.astype(bf16)

        ctxs = []
        for n in range(num_heads):                  # static; head-major slabs
            widx = (l * num_heads + n) * 3
            bidx = base + n * 3
            qh = (jnp.dot(h_bf, wqkv_ref[widx + 0], preferred_element_type=f32)
                  + misc_ref[bidx + 0:bidx + 1, 0:head_dim])          # (S, HD)
            kh = (jnp.dot(h_bf, wqkv_ref[widx + 1], preferred_element_type=f32)
                  + misc_ref[bidx + 1:bidx + 2, 0:head_dim])
            vh = (jnp.dot(h_bf, wqkv_ref[widx + 2], preferred_element_type=f32)
                  + misc_ref[bidx + 2:bidx + 3, 0:head_dim])
            scores = jax.lax.dot_general(
                qh.astype(bf16), kh.astype(bf16), (((1,), (1,)), ((), ())),
                preferred_element_type=f32) * scale + add_mask        # (S, S)
            m = jnp.max(scores, axis=-1, keepdims=True)
            e = jnp.exp(scores - m)
            probs = e * pl.reciprocal(jnp.sum(e, axis=-1, keepdims=True),
                                      approx=True)
            ctxs.append(jnp.dot(probs.astype(bf16), vh.astype(bf16),
                                preferred_element_type=f32))           # (S, HD)

        ctx = jnp.concatenate(ctxs, axis=-1)        # (S, H), stays in vregs

        attn = (jnp.dot(ctx.astype(bf16), wo_ref[l], preferred_element_type=f32)
                + misc_ref[ob + 0:ob + 1, 0:hidden])
        h = _layernorm(attn + h, ln_row(ob + 3), ln_row(ob + 4))

        inter = _gelu(jnp.dot(h.astype(bf16), w1_ref[l],
                              preferred_element_type=f32)
                      + misc_ref[ob + 1:ob + 2, 0:intermediate])
        ff = (jnp.dot(inter.astype(bf16), w2_ref[l], preferred_element_type=f32)
              + misc_ref[ob + 2:ob + 3, 0:hidden])
        h = _layernorm(ff + h, ln_row(ob + 5), ln_row(ob + 6))

    # ---- QA head: lane-dense (S, 128) store; cols >= 2 are zero padding -----
    out_ref[...] = (jnp.dot(h.astype(bf16), qaw_ref[...],
                            preferred_element_type=f32)
                    + misc_ref[2:3, :])


# ------------------------------ parameter init -------------------------------
def init_params(key):
    def normal(k, shape):
        return (INIT_RANGE * jax.random.normal(k, shape)).astype(jnp.float32)

    ks = jax.random.split(key, 8)
    L, H, I, NH, HD = NUM_LAYERS, HIDDEN, INTERMEDIATE, NUM_HEADS, HEAD_DIM

    # misc slab: biases zero (as init_bert_weights), LN gammas one.
    misc = jnp.zeros((MISC_ROWS_PAD, 128), jnp.float32)
    misc = misc.at[0, :H].set(1.0)                      # embedding LN gamma
    for l in range(L):
        ob = 3 + l * ROWS_PER_LAYER + NH * 3
        misc = misc.at[ob + 3, :H].set(1.0)             # ln1 gamma
        misc = misc.at[ob + 5, :H].set(1.0)             # ln2 gamma

    qa_w = jnp.zeros((H, QA_PAD), jnp.float32).at[:, :2].set(
        normal(ks[7], (H, 2)))

    return {
        # embedding tables kept f32 (exact one-hot gather); tiny.
        "word_emb": normal(ks[0], (VOCAB_SIZE, H)),
        "tok_emb": normal(ks[1], (TYPE_VOCAB, H)),
        "pos_emb": normal(ks[2], (MAX_POS, H)),
        # matmul weights stored bf16 (MXU-native), head-major QKV slabs.
        "wqkv": normal(ks[3], (L * NH * 3, H, HD)).astype(jnp.bfloat16),
        "wo": normal(ks[4], (L, H, H)).astype(jnp.bfloat16),
        "w1": normal(ks[5], (L, H, I)).astype(jnp.bfloat16),
        "w2": normal(ks[6], (L, I, H)).astype(jnp.bfloat16),
        "qa_w": qa_w.astype(jnp.bfloat16),
        "misc": misc,
    }


# ------------------------------ forward (wrapper) ----------------------------
def super_bert_qa_forward(params, x):
    """x: int32 [B, S, 3] = stack(input_ids, attention_mask, token_type_ids)."""
    B, S, _ = x.shape

    ids = x[..., 0].astype(jnp.int32)
    mask = x[..., 1].astype(jnp.float32)
    tok = x[..., 2].astype(jnp.int32)

    tok_ids = jnp.stack([ids, tok], axis=-1)                    # (B, S, 2) int32
    add_mask = ((1.0 - mask) * -10000.0).reshape(B, 1, S)        # (B, 1, S) f32

    # word | type | pos rows concatenated -> one gather table operand
    emb_table = jnp.concatenate(
        [params["word_emb"], params["tok_emb"], params["pos_emb"][:S]], axis=0)
    total_rows = VOCAB_SIZE + TYPE_VOCAB + S

    kern = functools.partial(
        bert_fused_kernel, seq=S, num_heads=NUM_HEADS, head_dim=HEAD_DIM,
        num_layers=NUM_LAYERS, vocab=VOCAB_SIZE, type_vocab=TYPE_VOCAB,
        intermediate=INTERMEDIATE)

    out_pad = pl.pallas_call(
        kern,
        out_shape=jax.ShapeDtypeStruct((B, S, QA_PAD), jnp.float32),
        grid=(B,),
        in_specs=[
            pl.BlockSpec((None, S, 2), lambda b: (b, 0, 0)),       # ids/token-type
            pl.BlockSpec((None, 1, S), lambda b: (b, 0, 0)),       # additive mask
            pl.BlockSpec((total_rows, HIDDEN), lambda b: (0, 0)),  # emb table
            pl.BlockSpec((MISC_ROWS_PAD, 128), lambda b: (0, 0)),  # biases + LNs
            pl.BlockSpec((NUM_LAYERS * NUM_HEADS * 3, HIDDEN, HEAD_DIM),
                         lambda b: (0, 0, 0)),                     # qkv (bf16)
            pl.BlockSpec((NUM_LAYERS, HIDDEN, HIDDEN), lambda b: (0, 0, 0)),
            pl.BlockSpec((NUM_LAYERS, HIDDEN, INTERMEDIATE), lambda b: (0, 0, 0)),
            pl.BlockSpec((NUM_LAYERS, INTERMEDIATE, HIDDEN), lambda b: (0, 0, 0)),
            pl.BlockSpec((HIDDEN, QA_PAD), lambda b: (0, 0)),      # qa_w (bf16)
        ],
        out_specs=pl.BlockSpec((None, S, QA_PAD), lambda b: (b, 0, 0)),
        compiler_params=pltpu.CompilerParams(
            dimension_semantics=("parallel",)),
    )(tok_ids, add_mask, emb_table, params["misc"],
      params["wqkv"], params["wo"], params["w1"], params["w2"], params["qa_w"])

    return out_pad[:, :, :2]                                      # (B, S, 2)


# ----------------------------------- main ------------------------------------
if __name__ == "__main__":
    key = jax.random.PRNGKey(0)
    pk, ik, tk = jax.random.split(key, 3)

    params = init_params(pk)

    input_ids = jax.random.randint(ik, (BATCH, SEQ), 0, VOCAB_SIZE, dtype=jnp.int32)
    attention_mask = jnp.concatenate(
        [jnp.ones((BATCH, SEQ - 2), jnp.int32),
         jnp.zeros((BATCH, 2), jnp.int32)], axis=-1)
    token_type_ids = jax.random.randint(tk, (BATCH, SEQ), 0, TYPE_VOCAB, dtype=jnp.int32)

    x = jnp.stack([input_ids, attention_mask, token_type_ids], axis=-1)  # (B, S, 3)

    fwd = jax.jit(super_bert_qa_forward)
    logits = fwd(params, x)
    logits = jax.block_until_ready(logits)

    assert logits.shape == (BATCH, SEQ, 2) and logits.dtype == jnp.float32
    print("KERNEL_OK")
</pallas_src>

<mosaic_0001>
module attributes {stable_mosaic.version = 11 : i64} {
  func.func @bert_fused_kernel(%arg0: i32, %arg1: memref<1x8x2xi32, #tpu.memory_space<vmem>>, %arg2: memref<1x1x8xf32, #tpu.memory_space<vmem>>, %arg3: memref<110x32xf32, #tpu.memory_space<vmem>>, %arg4: memref<32x128xf32, #tpu.memory_space<vmem>>, %arg5: memref<12x32x16xbf16, #tpu.memory_space<vmem>>, %arg6: memref<2x32x32xbf16, #tpu.memory_space<vmem>>, %arg7: memref<2x32x64xbf16, #tpu.memory_space<vmem>>, %arg8: memref<2x64x32xbf16, #tpu.memory_space<vmem>>, %arg9: memref<32x128xbf16, #tpu.memory_space<vmem>>, %arg10: memref<1x8x128xf32, #tpu.memory_space<vmem>>) attributes {dimension_semantics = [#tpu.dimension_semantics<parallel>], iteration_bounds = array<i64: 2>, scalar_prefetch = 0 : i64, scratch_operands = 0 : i64, tpu.core_type = #tpu.core_type<tc>, window_params = [{transform_indices = @transform_0, window_bounds = array<i64: 1, 8, 2>}, {transform_indices = @transform_1, window_bounds = array<i64: 1, 1, 8>}, {pipeline_mode = #tpu.pipeline_mode<synchronous>, transform_indices = @transform_2, window_bounds = array<i64: 110, 32>}, {pipeline_mode = #tpu.pipeline_mode<synchronous>, transform_indices = @transform_3, window_bounds = array<i64: 32, 128>}, {pipeline_mode = #tpu.pipeline_mode<synchronous>, transform_indices = @transform_4, window_bounds = array<i64: 12, 32, 16>}, {pipeline_mode = #tpu.pipeline_mode<synchronous>, transform_indices = @transform_5, window_bounds = array<i64: 2, 32, 32>}, {pipeline_mode = #tpu.pipeline_mode<synchronous>, transform_indices = @transform_6, window_bounds = array<i64: 2, 32, 64>}, {pipeline_mode = #tpu.pipeline_mode<synchronous>, transform_indices = @transform_7, window_bounds = array<i64: 2, 64, 32>}, {pipeline_mode = #tpu.pipeline_mode<synchronous>, transform_indices = @transform_8, window_bounds = array<i64: 32, 128>}, {transform_indices = @transform_9, window_bounds = array<i64: 1, 8, 128>}]} {
    %c0 = arith.constant 0 : index
    %c0_0 = arith.constant 0 : index
    %c0_1 = arith.constant 0 : index
    %0 = vector.load %arg1[%c0, %c0_0, %c0_1] : memref<1x8x2xi32, #tpu.memory_space<vmem>>, vector<1x8x1xi32>
    %1 = vector.shape_cast %0 : vector<1x8x1xi32> to vector<8x1xi32>
    %c0_2 = arith.constant 0 : index
    %c0_3 = arith.constant 0 : index
    %c1 = arith.constant 1 : index
    %2 = vector.load %arg1[%c0_2, %c0_3, %c1] : memref<1x8x2xi32, #tpu.memory_space<vmem>>, vector<1x8x1xi32>
    %3 = vector.shape_cast %2 : vector<1x8x1xi32> to vector<8x1xi32>
    %c0_4 = arith.constant 0 : index
    %c0_5 = arith.constant 0 : index
    %c0_6 = arith.constant 0 : index
    %4 = vector.load %arg2[%c0_4, %c0_5, %c0_6] : memref<1x1x8xf32, #tpu.memory_space<vmem>>, vector<1x1x8xf32>
    %5 = vector.shape_cast %4 : vector<1x1x8xf32> to vector<1x8xf32>
    %6 = tpu.iota {dimensions = array<i32: 1>} : vector<8x110xi32>
    %7 = tpu.iota {dimensions = array<i32: 0>} : vector<8x110xi32>
    %8 = vector.broadcast %1 : vector<8x1xi32> to vector<8x110xi32>
    %9 = arith.cmpi eq, %6, %8 : vector<8x110xi32>
    %10 = arith.extui %9 : vector<8x110xi1> to vector<8x110xi32>
    %11 = arith.sitofp %10 : vector<8x110xi32> to vector<8x110xf32>
    %c100_i32 = arith.constant 100 : i32
    %12 = vector.broadcast %c100_i32 : i32 to vector<8x1xi32>
    %13 = arith.addi %3, %12 : vector<8x1xi32>
    %14 = vector.broadcast %13 : vector<8x1xi32> to vector<8x110xi32>
    %15 = arith.cmpi eq, %6, %14 : vector<8x110xi32>
    %16 = arith.extui %15 : vector<8x110xi1> to vector<8x110xi32>
    %17 = arith.sitofp %16 : vector<8x110xi32> to vector<8x110xf32>
    %18 = arith.addf %11, %17 : vector<8x110xf32>
    %c100_i32_7 = arith.constant 100 : i32
    %19 = vector.broadcast %c100_i32_7 : i32 to vector<8x110xi32>
    %20 = arith.addi %7, %19 : vector<8x110xi32>
    %c2_i32 = arith.constant 2 : i32
    %21 = vector.broadcast %c2_i32 : i32 to vector<8x110xi32>
    %22 = arith.addi %20, %21 : vector<8x110xi32>
    %23 = arith.cmpi eq, %6, %22 : vector<8x110xi32>
    %24 = arith.extui %23 : vector<8x110xi1> to vector<8x110xi32>
    %25 = arith.sitofp %24 : vector<8x110xi32> to vector<8x110xf32>
    %26 = arith.addf %18, %25 : vector<8x110xf32>
    %c0_8 = arith.constant 0 : index
    %c0_9 = arith.constant 0 : index
    %27 = vector.load %arg3[%c0_8, %c0_9] : memref<110x32xf32, #tpu.memory_space<vmem>>, vector<110x32xf32>
    %cst = arith.constant dense<0.000000e+00> : vector<8x32xf32>
    %28 = tpu.matmul %26, %27, %cst {dimension_numbers = #tpu.dot_dimension_numbers<[1], [0], [0], [1], [0, 0, 1, 1], [], []>} : vector<8x110xf32>, vector<110x32xf32>, vector<8x32xf32> -> vector<8x32xf32>
    %c0_10 = arith.constant 0 : index
    %c0_11 = arith.constant 0 : index
    %29 = vector.load %arg4[%c0_10, %c0_11] : memref<32x128xf32, #tpu.memory_space<vmem>>, vector<1x32xf32>
    %c1_12 = arith.constant 1 : index
    %c0_13 = arith.constant 0 : index
    %30 = vector.load %arg4[%c1_12, %c0_13] : memref<32x128xf32, #tpu.memory_space<vmem>>, vector<1x32xf32>
    %cst_14 = arith.constant dense<0.000000e+00> : vector<8xf32>
    %31 = vector.multi_reduction <add>, %28, %cst_14 [1] : vector<8x32xf32> to vector<8xf32>
    %32 = vector.shape_cast %31 : vector<8xf32> to vector<8x1xf32>
    %cst_15 = arith.constant 3.125000e-02 : f32
    %33 = vector.broadcast %cst_15 : f32 to vector<8x1xf32>
    %34 = arith.mulf %32, %33 : vector<8x1xf32>
    %35 = vector.broadcast %34 : vector<8x1xf32> to vector<8x32xf32>
    %36 = arith.subf %28, %35 : vector<8x32xf32>
    %37 = arith.mulf %36, %36 : vector<8x32xf32>
    %cst_16 = arith.constant dense<0.000000e+00> : vector<8xf32>
    %38 = vector.multi_reduction <add>, %37, %cst_16 [1] : vector<8x32xf32> to vector<8xf32>
    %39 = vector.shape_cast %38 : vector<8xf32> to vector<8x1xf32>
    %cst_17 = arith.constant 3.125000e-02 : f32
    %40 = vector.broadcast %cst_17 : f32 to vector<8x1xf32>
    %41 = arith.mulf %39, %40 : vector<8x1xf32>
    %cst_18 = arith.constant 9.99999996E-13 : f32
    %42 = vector.broadcast %cst_18 : f32 to vector<8x1xf32>
    %43 = arith.addf %41, %42 : vector<8x1xf32>
    %44 = math.rsqrt %43 : vector<8x1xf32>
    %45 = vector.broadcast %44 : vector<8x1xf32> to vector<8x32xf32>
    %46 = arith.mulf %36, %45 : vector<8x32xf32>
    %47 = vector.broadcast %29 : vector<1x32xf32> to vector<8x32xf32>
    %48 = arith.mulf %46, %47 : vector<8x32xf32>
    %49 = vector.broadcast %30 : vector<1x32xf32> to vector<8x32xf32>
    %50 = arith.addf %48, %49 : vector<8x32xf32>
    %51 = arith.truncf %50 : vector<8x32xf32> to vector<8x32xbf16>
    %c0_19 = arith.constant 0 : index
    %c0_20 = arith.constant 0 : index
    %c0_21 = arith.constant 0 : index
    %52 = vector.load %arg5[%c0_19, %c0_20, %c0_21] : memref<12x32x16xbf16, #tpu.memory_space<vmem>>, vector<1x32x16xbf16>
    %53 = vector.shape_cast %52 : vector<1x32x16xbf16> to vector<32x16xbf16>
    %cst_22 = arith.constant dense<0.000000e+00> : vector<8x16xf32>
    %54 = tpu.matmul %51, %53, %cst_22 {dimension_numbers = #tpu.dot_dimension_numbers<[1], [0], [0], [1], [0, 0, 1, 1], [], []>} : vector<8x32xbf16>, vector<32x16xbf16>, vector<8x16xf32> -> vector<8x16xf32>
    %c3 = arith.constant 3 : index
    %c0_23 = arith.constant 0 : index
    %55 = vector.load %arg4[%c3, %c0_23] : memref<32x128xf32, #tpu.memory_space<vmem>>, vector<1x16xf32>
    %56 = vector.broadcast %55 : vector<1x16xf32> to vector<8x16xf32>
    %57 = arith.addf %54, %56 : vector<8x16xf32>
    %c1_24 = arith.constant 1 : index
    %c0_25 = arith.constant 0 : index
    %c0_26 = arith.constant 0 : index
    %58 = vector.load %arg5[%c1_24, %c0_25, %c0_26] : memref<12x32x16xbf16, #tpu.memory_space<vmem>>, vector<1x32x16xbf16>
    %59 = vector.shape_cast %58 : vector<1x32x16xbf16> to vector<32x16xbf16>
    %cst_27 = arith.constant dense<0.000000e+00> : vector<8x16xf32>
    %60 = tpu.matmul %51, %59, %cst_27 {dimension_numbers = #tpu.dot_dimension_numbers<[1], [0], [0], [1], [0, 0, 1, 1], [], []>} : vector<8x32xbf16>, vector<32x16xbf16>, vector<8x16xf32> -> vector<8x16xf32>
    %c4 = arith.constant 4 : index
    %c0_28 = arith.constant 0 : index
    %61 = vector.load %arg4[%c4, %c0_28] : memref<32x128xf32, #tpu.memory_space<vmem>>, vector<1x16xf32>
    %62 = vector.broadcast %61 : vector<1x16xf32> to vector<8x16xf32>
    %63 = arith.addf %60, %62 : vector<8x16xf32>
    %c2 = arith.constant 2 : index
    %c0_29 = arith.constant 0 : index
    %c0_30 = arith.constant 0 : index
    %64 = vector.load %arg5[%c2, %c0_29, %c0_30] : memref<12x32x16xbf16, #tpu.memory_space<vmem>>, vector<1x32x16xbf16>
    %65 = vector.shape_cast %64 : vector<1x32x16xbf16> to vector<32x16xbf16>
    %cst_31 = arith.constant dense<0.000000e+00> : vector<8x16xf32>
    %66 = tpu.matmul %51, %65, %cst_31 {dimension_numbers = #tpu.dot_dimension_numbers<[1], [0], [0], [1], [0, 0, 1, 1], [], []>} : vector<8x32xbf16>, vector<32x16xbf16>, vector<8x16xf32> -> vector<8x16xf32>
    %c5 = arith.constant 5 : index
    %c0_32 = arith.constant 0 : index
    %67 = vector.load %arg4[%c5, %c0_32] : memref<32x128xf32, #tpu.memory_space<vmem>>, vector<1x16xf32>
    %68 = vector.broadcast %67 : vector<1x16xf32> to vector<8x16xf32>
    %69 = arith.addf %66, %68 : vector<8x16xf32>
    %70 = arith.truncf %57 : vector<8x16xf32> to vector<8x16xbf16>
    %71 = arith.truncf %63 : vector<8x16xf32> to vector<8x16xbf16>
    %cst_33 = arith.constant dense<0.000000e+00> : vector<8x8xf32>
    %72 = tpu.matmul %70, %71, %cst_33 {dimension_numbers = #tpu.dot_dimension_numbers<[1], [1], [0], [0], [0, 0, 1, 0], [], []>} : vector<8x16xbf16>, vector<8x16xbf16>, vector<8x8xf32> -> vector<8x8xf32>
    %cst_34 = arith.constant 2.500000e-01 : f32
    %73 = vector.broadcast %cst_34 : f32 to vector<8x8xf32>
    %74 = arith.mulf %72, %73 : vector<8x8xf32>
    %75 = vector.broadcast %5 : vector<1x8xf32> to vector<8x8xf32>
    %76 = arith.addf %74, %75 : vector<8x8xf32>
    %cst_35 = arith.constant dense<0xFF800000> : vector<8xf32>
    %77 = vector.multi_reduction <maximumf>, %76, %cst_35 [1] : vector<8x8xf32> to vector<8xf32>
    %78 = vector.shape_cast %77 : vector<8xf32> to vector<8x1xf32>
    %79 = vector.broadcast %78 : vector<8x1xf32> to vector<8x8xf32>
    %80 = arith.subf %76, %79 : vector<8x8xf32>
    %81 = math.exp %80 : vector<8x8xf32>
    %cst_36 = arith.constant dense<0.000000e+00> : vector<8xf32>
    %82 = vector.multi_reduction <add>, %81, %cst_36 [1] : vector<8x8xf32> to vector<8xf32>
    %83 = vector.shape_cast %82 : vector<8xf32> to vector<8x1xf32>
    %84 = tpu.reciprocal %83 {approx = true} : vector<8x1xf32> -> vector<8x1xf32>
    %85 = vector.broadcast %84 : vector<8x1xf32> to vector<8x8xf32>
    %86 = arith.mulf %81, %85 : vector<8x8xf32>
    %87 = arith.truncf %86 : vector<8x8xf32> to vector<8x8xbf16>
    %88 = arith.truncf %69 : vector<8x16xf32> to vector<8x16xbf16>
    %cst_37 = arith.constant dense<0.000000e+00> : vector<8x16xf32>
    %89 = tpu.matmul %87, %88, %cst_37 {dimension_numbers = #tpu.dot_dimension_numbers<[1], [0], [0], [1], [0, 0, 1, 1], [], []>} : vector<8x8xbf16>, vector<8x16xbf16>, vector<8x16xf32> -> vector<8x16xf32>
    %c3_38 = arith.constant 3 : index
    %c0_39 = arith.constant 0 : index
    %c0_40 = arith.constant 0 : index
    %90 = vector.load %arg5[%c3_38, %c0_39, %c0_40] : memref<12x32x16xbf16, #tpu.memory_space<vmem>>, vector<1x32x16xbf16>
    %91 = vector.shape_cast %90 : vector<1x32x16xbf16> to vector<32x16xbf16>
    %cst_41 = arith.constant dense<0.000000e+00> : vector<8x16xf32>
    %92 = tpu.matmul %51, %91, %cst_41 {dimension_numbers = #tpu.dot_dimension_numbers<[1], [0], [0], [1], [0, 0, 1, 1], [], []>} : vector<8x32xbf16>, vector<32x16xbf16>, vector<8x16xf32> -> vector<8x16xf32>
    %c6 = arith.constant 6 : index
    %c0_42 = arith.constant 0 : index
    %93 = vector.load %arg4[%c6, %c0_42] : memref<32x128xf32, #tpu.memory_space<vmem>>, vector<1x16xf32>
    %94 = vector.broadcast %93 : vector<1x16xf32> to vector<8x16xf32>
    %95 = arith.addf %92, %94 : vector<8x16xf32>
    %c4_43 = arith.constant 4 : index
    %c0_44 = arith.constant 0 : index
    %c0_45 = arith.constant 0 : index
    %96 = vector.load %arg5[%c4_43, %c0_44, %c0_45] : memref<12x32x16xbf16, #tpu.memory_space<vmem>>, vector<1x32x16xbf16>
    %97 = vector.shape_cast %96 : vector<1x32x16xbf16> to vector<32x16xbf16>
    %cst_46 = arith.constant dense<0.000000e+00> : vector<8x16xf32>
    %98 = tpu.matmul %51, %97, %cst_46 {dimension_numbers = #tpu.dot_dimension_numbers<[1], [0], [0], [1], [0, 0, 1, 1], [], []>} : vector<8x32xbf16>, vector<32x16xbf16>, vector<8x16xf32> -> vector<8x16xf32>
    %c7 = arith.constant 7 : index
    %c0_47 = arith.constant 0 : index
    %99 = vector.load %arg4[%c7, %c0_47] : memref<32x128xf32, #tpu.memory_space<vmem>>, vector<1x16xf32>
    %100 = vector.broadcast %99 : vector<1x16xf32> to vector<8x16xf32>
    %101 = arith.addf %98, %100 : vector<8x16xf32>
    %c5_48 = arith.constant 5 : index
    %c0_49 = arith.constant 0 : index
    %c0_50 = arith.constant 0 : index
    %102 = vector.load %arg5[%c5_48, %c0_49, %c0_50] : memref<12x32x16xbf16, #tpu.memory_space<vmem>>, vector<1x32x16xbf16>
    %103 = vector.shape_cast %102 : vector<1x32x16xbf16> to vector<32x16xbf16>
    %cst_51 = arith.constant dense<0.000000e+00> : vector<8x16xf32>
    %104 = tpu.matmul %51, %103, %cst_51 {dimension_numbers = #tpu.dot_dimension_numbers<[1], [0], [0], [1], [0, 0, 1, 1], [], []>} : vector<8x32xbf16>, vector<32x16xbf16>, vector<8x16xf32> -> vector<8x16xf32>
    %c8 = arith.constant 8 : index
    %c0_52 = arith.constant 0 : index
    %105 = vector.load %arg4[%c8, %c0_52] : memref<32x128xf32, #tpu.memory_space<vmem>>, vector<1x16xf32>
    %106 = vector.broadcast %105 : vector<1x16xf32> to vector<8x16xf32>
    %107 = arith.addf %104, %106 : vector<8x16xf32>
    %108 = arith.truncf %95 : vector<8x16xf32> to vector<8x16xbf16>
    %109 = arith.truncf %101 : vector<8x16xf32> to vector<8x16xbf16>
    %cst_53 = arith.constant dense<0.000000e+00> : vector<8x8xf32>
    %110 = tpu.matmul %108, %109, %cst_53 {dimension_numbers = #tpu.dot_dimension_numbers<[1], [1], [0], [0], [0, 0, 1, 0], [], []>} : vector<8x16xbf16>, vector<8x16xbf16>, vector<8x8xf32> -> vector<8x8xf32>
    %cst_54 = arith.constant 2.500000e-01 : f32
    %111 = vector.broadcast %cst_54 : f32 to vector<8x8xf32>
    %112 = arith.mulf %110, %111 : vector<8x8xf32>
    %113 = vector.broadcast %5 : vector<1x8xf32> to vector<8x8xf32>
    %114 = arith.addf %112, %113 : vector<8x8xf32>
    %cst_55 = arith.constant dense<0xFF800000> : vector<8xf32>
    %115 = vector.multi_reduction <maximumf>, %114, %cst_55 [1] : vector<8x8xf32> to vector<8xf32>
    %116 = vector.shape_cast %115 : vector<8xf32> to vector<8x1xf32>
    %117 = vector.broadcast %116 : vector<8x1xf32> to vector<8x8xf32>
    %118 = arith.subf %114, %117 : vector<8x8xf32>
    %119 = math.exp %118 : vector<8x8xf32>
    %cst_56 = arith.constant dense<0.000000e+00> : vector<8xf32>
    %120 = vector.multi_reduction <add>, %119, %cst_56 [1] : vector<8x8xf32> to vector<8xf32>
    %121 = vector.shape_cast %120 : vector<8xf32> to vector<8x1xf32>
    %122 = tpu.reciprocal %121 {approx = true} : vector<8x1xf32> -> vector<8x1xf32>
    %123 = vector.broadcast %122 : vector<8x1xf32> to vector<8x8xf32>
    %124 = arith.mulf %119, %123 : vector<8x8xf32>
    %125 = arith.truncf %124 : vector<8x8xf32> to vector<8x8xbf16>
    %126 = arith.truncf %107 : vector<8x16xf32> to vector<8x16xbf16>
    %cst_57 = arith.constant dense<0.000000e+00> : vector<8x16xf32>
    %127 = tpu.matmul %125, %126, %cst_57 {dimension_numbers = #tpu.dot_dimension_numbers<[1], [0], [0], [1], [0, 0, 1, 1], [], []>} : vector<8x8xbf16>, vector<8x16xbf16>, vector<8x16xf32> -> vector<8x16xf32>
    %128 = tpu.concatenate %89, %127 in 1 : vector<8x16xf32>, vector<8x16xf32> -> vector<8x32xf32>
    %129 = arith.truncf %128 : vector<8x32xf32> to vector<8x32xbf16>
    %c0_58 = arith.constant 0 : index
    %c0_59 = arith.constant 0 : index
    %c0_60 = arith.constant 0 : index
    %130 = vector.load %arg6[%c0_58, %c0_59, %c0_60] : memref<2x32x32xbf16, #tpu.memory_space<vmem>>, vector<1x32x32xbf16>
    %131 = vector.shape_cast %130 : vector<1x32x32xbf16> to vector<32x32xbf16>
    %cst_61 = arith.constant dense<0.000000e+00> : vector<8x32xf32>
    %132 = tpu.matmul %129, %131, %cst_61 {dimension_numbers = #tpu.dot_dimension_numbers<[1], [0], [0], [1], [0, 0, 1, 1], [], []>} : vector<8x32xbf16>, vector<32x32xbf16>, vector<8x32xf32> -> vector<8x32xf32>
    %c9 = arith.constant 9 : index
    %c0_62 = arith.constant 0 : index
    %133 = vector.load %arg4[%c9, %c0_62] : memref<32x128xf32, #tpu.memory_space<vmem>>, vector<1x32xf32>
    %134 = vector.broadcast %133 : vector<1x32xf32> to vector<8x32xf32>
    %135 = arith.addf %132, %134 : vector<8x32xf32>
    %136 = arith.addf %135, %50 : vector<8x32xf32>
    %c12 = arith.constant 12 : index
    %c0_63 = arith.constant 0 : index
    %137 = vector.load %arg4[%c12, %c0_63] : memref<32x128xf32, #tpu.memory_space<vmem>>, vector<1x32xf32>
    %c13 = arith.constant 13 : index
    %c0_64 = arith.constant 0 : index
    %138 = vector.load %arg4[%c13, %c0_64] : memref<32x128xf32, #tpu.memory_space<vmem>>, vector<1x32xf32>
    %cst_65 = arith.constant dense<0.000000e+00> : vector<8xf32>
    %139 = vector.multi_reduction <add>, %136, %cst_65 [1] : vector<8x32xf32> to vector<8xf32>
    %140 = vector.shape_cast %139 : vector<8xf32> to vector<8x1xf32>
    %cst_66 = arith.constant 3.125000e-02 : f32
    %141 = vector.broadcast %cst_66 : f32 to vector<8x1xf32>
    %142 = arith.mulf %140, %141 : vector<8x1xf32>
    %143 = vector.broadcast %142 : vector<8x1xf32> to vector<8x32xf32>
    %144 = arith.subf %136, %143 : vector<8x32xf32>
    %145 = arith.mulf %144, %144 : vector<8x32xf32>
    %cst_67 = arith.constant dense<0.000000e+00> : vector<8xf32>
    %146 = vector.multi_reduction <add>, %145, %cst_67 [1] : vector<8x32xf32> to vector<8xf32>
    %147 = vector.shape_cast %146 : vector<8xf32> to vector<8x1xf32>
    %cst_68 = arith.constant 3.125000e-02 : f32
    %148 = vector.broadcast %cst_68 : f32 to vector<8x1xf32>
    %149 = arith.mulf %147, %148 : vector<8x1xf32>
    %cst_69 = arith.constant 9.99999996E-13 : f32
    %150 = vector.broadcast %cst_69 : f32 to vector<8x1xf32>
    %151 = arith.addf %149, %150 : vector<8x1xf32>
    %152 = math.rsqrt %151 : vector<8x1xf32>
    %153 = vector.broadcast %152 : vector<8x1xf32> to vector<8x32xf32>
    %154 = arith.mulf %144, %153 : vector<8x32xf32>
    %155 = vector.broadcast %137 : vector<1x32xf32> to vector<8x32xf32>
    %156 = arith.mulf %154, %155 : vector<8x32xf32>
    %157 = vector.broadcast %138 : vector<1x32xf32> to vector<8x32xf32>
    %158 = arith.addf %156, %157 : vector<8x32xf32>
    %159 = arith.truncf %158 : vector<8x32xf32> to vector<8x32xbf16>
    %c0_70 = arith.constant 0 : index
    %c0_71 = arith.constant 0 : index
    %c0_72 = arith.constant 0 : index
    %160 = vector.load %arg7[%c0_70, %c0_71, %c0_72] : memref<2x32x64xbf16, #tpu.memory_space<vmem>>, vector<1x32x64xbf16>
    %161 = vector.shape_cast %160 : vector<1x32x64xbf16> to vector<32x64xbf16>
    %cst_73 = arith.constant dense<0.000000e+00> : vector<8x64xf32>
    %162 = tpu.matmul %159, %161, %cst_73 {dimension_numbers = #tpu.dot_dimension_numbers<[1], [0], [0], [1], [0, 0, 1, 1], [], []>} : vector<8x32xbf16>, vector<32x64xbf16>, vector<8x64xf32> -> vector<8x64xf32>
    %c10 = arith.constant 10 : index
    %c0_74 = arith.constant 0 : index
    %163 = vector.load %arg4[%c10, %c0_74] : memref<32x128xf32, #tpu.memory_space<vmem>>, vector<1x64xf32>
    %164 = vector.broadcast %163 : vector<1x64xf32> to vector<8x64xf32>
    %165 = arith.addf %162, %164 : vector<8x64xf32>
    %cst_75 = arith.constant 5.000000e-01 : f32
    %166 = vector.broadcast %cst_75 : f32 to vector<8x64xf32>
    %167 = arith.mulf %165, %166 : vector<8x64xf32>
    %cst_76 = arith.constant 2.000000e+00 : f32
    %168 = math.sqrt %cst_76 : f32
    %169 = vector.broadcast %168 : f32 to vector<8x64xf32>
    %170 = arith.divf %165, %169 : vector<8x64xf32>
    %171 = math.erf %170 : vector<8x64xf32>
    %cst_77 = arith.constant 1.000000e+00 : f32
    %172 = vector.broadcast %cst_77 : f32 to vector<8x64xf32>
    %173 = arith.addf %172, %171 : vector<8x64xf32>
    %174 = arith.mulf %167, %173 : vector<8x64xf32>
    %175 = arith.truncf %174 : vector<8x64xf32> to vector<8x64xbf16>
    %c0_78 = arith.constant 0 : index
    %c0_79 = arith.constant 0 : index
    %c0_80 = arith.constant 0 : index
    %176 = vector.load %arg8[%c0_78, %c0_79, %c0_80] : memref<2x64x32xbf16, #tpu.memory_space<vmem>>, vector<1x64x32xbf16>
    %177 = vector.shape_cast %176 : vector<1x64x32xbf16> to vector<64x32xbf16>
    %cst_81 = arith.constant dense<0.000000e+00> : vector<8x32xf32>
    %178 = tpu.matmul %175, %177, %cst_81 {dimension_numbers = #tpu.dot_dimension_numbers<[1], [0], [0], [1], [0, 0, 1, 1], [], []>} : vector<8x64xbf16>, vector<64x32xbf16>, vector<8x32xf32> -> vector<8x32xf32>
    %c11 = arith.constant 11 : index
    %c0_82 = arith.constant 0 : index
    %179 = vector.load %arg4[%c11, %c0_82] : memref<32x128xf32, #tpu.memory_space<vmem>>, vector<1x32xf32>
    %180 = vector.broadcast %179 : vector<1x32xf32> to vector<8x32xf32>
    %181 = arith.addf %178, %180 : vector<8x32xf32>
    %182 = arith.addf %181, %158 : vector<8x32xf32>
    %c14 = arith.constant 14 : index
    %c0_83 = arith.constant 0 : index
    %183 = vector.load %arg4[%c14, %c0_83] : memref<32x128xf32, #tpu.memory_space<vmem>>, vector<1x32xf32>
    %c15 = arith.constant 15 : index
    %c0_84 = arith.constant 0 : index
    %184 = vector.load %arg4[%c15, %c0_84] : memref<32x128xf32, #tpu.memory_space<vmem>>, vector<1x32xf32>
    %cst_85 = arith.constant dense<0.000000e+00> : vector<8xf32>
    %185 = vector.multi_reduction <add>, %182, %cst_85 [1] : vector<8x32xf32> to vector<8xf32>
    %186 = vector.shape_cast %185 : vector<8xf32> to vector<8x1xf32>
    %cst_86 = arith.constant 3.125000e-02 : f32
    %187 = vector.broadcast %cst_86 : f32 to vector<8x1xf32>
    %188 = arith.mulf %186, %187 : vector<8x1xf32>
    %189 = vector.broadcast %188 : vector<8x1xf32> to vector<8x32xf32>
    %190 = arith.subf %182, %189 : vector<8x32xf32>
    %191 = arith.mulf %190, %190 : vector<8x32xf32>
    %cst_87 = arith.constant dense<0.000000e+00> : vector<8xf32>
    %192 = vector.multi_reduction <add>, %191, %cst_87 [1] : vector<8x32xf32> to vector<8xf32>
    %193 = vector.shape_cast %192 : vector<8xf32> to vector<8x1xf32>
    %cst_88 = arith.constant 3.125000e-02 : f32
    %194 = vector.broadcast %cst_88 : f32 to vector<8x1xf32>
    %195 = arith.mulf %193, %194 : vector<8x1xf32>
    %cst_89 = arith.constant 9.99999996E-13 : f32
    %196 = vector.broadcast %cst_89 : f32 to vector<8x1xf32>
    %197 = arith.addf %195, %196 : vector<8x1xf32>
    %198 = math.rsqrt %197 : vector<8x1xf32>
    %199 = vector.broadcast %198 : vector<8x1xf32> to vector<8x32xf32>
    %200 = arith.mulf %190, %199 : vector<8x32xf32>
    %201 = vector.broadcast %183 : vector<1x32xf32> to vector<8x32xf32>
    %202 = arith.mulf %200, %201 : vector<8x32xf32>
    %203 = vector.broadcast %184 : vector<1x32xf32> to vector<8x32xf32>
    %204 = arith.addf %202, %203 : vector<8x32xf32>
    %205 = arith.truncf %204 : vector<8x32xf32> to vector<8x32xbf16>
    %c6_90 = arith.constant 6 : index
    %c0_91 = arith.constant 0 : index
    %c0_92 = arith.constant 0 : index
    %206 = vector.load %arg5[%c6_90, %c0_91, %c0_92] : memref<12x32x16xbf16, #tpu.memory_space<vmem>>, vector<1x32x16xbf16>
    %207 = vector.shape_cast %206 : vector<1x32x16xbf16> to vector<32x16xbf16>
    %cst_93 = arith.constant dense<0.000000e+00> : vector<8x16xf32>
    %208 = tpu.matmul %205, %207, %cst_93 {dimension_numbers = #tpu.dot_dimension_numbers<[1], [0], [0], [1], [0, 0, 1, 1], [], []>} : vector<8x32xbf16>, vector<32x16xbf16>, vector<8x16xf32> -> vector<8x16xf32>
    %c16 = arith.constant 16 : index
    %c0_94 = arith.constant 0 : index
    %209 = vector.load %arg4[%c16, %c0_94] : memref<32x128xf32, #tpu.memory_space<vmem>>, vector<1x16xf32>
    %210 = vector.broadcast %209 : vector<1x16xf32> to vector<8x16xf32>
    %211 = arith.addf %208, %210 : vector<8x16xf32>
    %c7_95 = arith.constant 7 : index
    %c0_96 = arith.constant 0 : index
    %c0_97 = arith.constant 0 : index
    %212 = vector.load %arg5[%c7_95, %c0_96, %c0_97] : memref<12x32x16xbf16, #tpu.memory_space<vmem>>, vector<1x32x16xbf16>
    %213 = vector.shape_cast %212 : vector<1x32x16xbf16> to vector<32x16xbf16>
    %cst_98 = arith.constant dense<0.000000e+00> : vector<8x16xf32>
    %214 = tpu.matmul %205, %213, %cst_98 {dimension_numbers = #tpu.dot_dimension_numbers<[1], [0], [0], [1], [0, 0, 1, 1], [], []>} : vector<8x32xbf16>, vector<32x16xbf16>, vector<8x16xf32> -> vector<8x16xf32>
    %c17 = arith.constant 17 : index
    %c0_99 = arith.constant 0 : index
    %215 = vector.load %arg4[%c17, %c0_99] : memref<32x128xf32, #tpu.memory_space<vmem>>, vector<1x16xf32>
    %216 = vector.broadcast %215 : vector<1x16xf32> to vector<8x16xf32>
    %217 = arith.addf %214, %216 : vector<8x16xf32>
    %c8_100 = arith.constant 8 : index
    %c0_101 = arith.constant 0 : index
    %c0_102 = arith.constant 0 : index
    %218 = vector.load %arg5[%c8_100, %c0_101, %c0_102] : memref<12x32x16xbf16, #tpu.memory_space<vmem>>, vector<1x32x16xbf16>
    %219 = vector.shape_cast %218 : vector<1x32x16xbf16> to vector<32x16xbf16>
    %cst_103 = arith.constant dense<0.000000e+00> : vector<8x16xf32>
    %220 = tpu.matmul %205, %219, %cst_103 {dimension_numbers = #tpu.dot_dimension_numbers<[1], [0], [0], [1], [0, 0, 1, 1], [], []>} : vector<8x32xbf16>, vector<32x16xbf16>, vector<8x16xf32> -> vector<8x16xf32>
    %c18 = arith.constant 18 : index
    %c0_104 = arith.constant 0 : index
    %221 = vector.load %arg4[%c18, %c0_104] : memref<32x128xf32, #tpu.memory_space<vmem>>, vector<1x16xf32>
    %222 = vector.broadcast %221 : vector<1x16xf32> to vector<8x16xf32>
    %223 = arith.addf %220, %222 : vector<8x16xf32>
    %224 = arith.truncf %211 : vector<8x16xf32> to vector<8x16xbf16>
    %225 = arith.truncf %217 : vector<8x16xf32> to vector<8x16xbf16>
    %cst_105 = arith.constant dense<0.000000e+00> : vector<8x8xf32>
    %226 = tpu.matmul %224, %225, %cst_105 {dimension_numbers = #tpu.dot_dimension_numbers<[1], [1], [0], [0], [0, 0, 1, 0], [], []>} : vector<8x16xbf16>, vector<8x16xbf16>, vector<8x8xf32> -> vector<8x8xf32>
    %cst_106 = arith.constant 2.500000e-01 : f32
    %227 = vector.broadcast %cst_106 : f32 to vector<8x8xf32>
    %228 = arith.mulf %226, %227 : vector<8x8xf32>
    %229 = vector.broadcast %5 : vector<1x8xf32> to vector<8x8xf32>
    %230 = arith.addf %228, %229 : vector<8x8xf32>
    %cst_107 = arith.constant dense<0xFF800000> : vector<8xf32>
    %231 = vector.multi_reduction <maximumf>, %230, %cst_107 [1] : vector<8x8xf32> to vector<8xf32>
    %232 = vector.shape_cast %231 : vector<8xf32> to vector<8x1xf32>
    %233 = vector.broadcast %232 : vector<8x1xf32> to vector<8x8xf32>
    %234 = arith.subf %230, %233 : vector<8x8xf32>
    %235 = math.exp %234 : vector<8x8xf32>
    %cst_108 = arith.constant dense<0.000000e+00> : vector<8xf32>
    %236 = vector.multi_reduction <add>, %235, %cst_108 [1] : vector<8x8xf32> to vector<8xf32>
    %237 = vector.shape_cast %236 : vector<8xf32> to vector<8x1xf32>
    %238 = tpu.reciprocal %237 {approx = true} : vector<8x1xf32> -> vector<8x1xf32>
    %239 = vector.broadcast %238 : vector<8x1xf32> to vector<8x8xf32>
    %240 = arith.mulf %235, %239 : vector<8x8xf32>
    %241 = arith.truncf %240 : vector<8x8xf32> to vector<8x8xbf16>
    %242 = arith.truncf %223 : vector<8x16xf32> to vector<8x16xbf16>
    %cst_109 = arith.constant dense<0.000000e+00> : vector<8x16xf32>
    %243 = tpu.matmul %241, %242, %cst_109 {dimension_numbers = #tpu.dot_dimension_numbers<[1], [0], [0], [1], [0, 0, 1, 1], [], []>} : vector<8x8xbf16>, vector<8x16xbf16>, vector<8x16xf32> -> vector<8x16xf32>
    %c9_110 = arith.constant 9 : index
    %c0_111 = arith.constant 0 : index
    %c0_112 = arith.constant 0 : index
    %244 = vector.load %arg5[%c9_110, %c0_111, %c0_112] : memref<12x32x16xbf16, #tpu.memory_space<vmem>>, vector<1x32x16xbf16>
    %245 = vector.shape_cast %244 : vector<1x32x16xbf16> to vector<32x16xbf16>
    %cst_113 = arith.constant dense<0.000000e+00> : vector<8x16xf32>
    %246 = tpu.matmul %205, %245, %cst_113 {dimension_numbers = #tpu.dot_dimension_numbers<[1], [0], [0], [1], [0, 0, 1, 1], [], []>} : vector<8x32xbf16>, vector<32x16xbf16>, vector<8x16xf32> -> vector<8x16xf32>
    %c19 = arith.constant 19 : index
    %c0_114 = arith.constant 0 : index
    %247 = vector.load %arg4[%c19, %c0_114] : memref<32x128xf32, #tpu.memory_space<vmem>>, vector<1x16xf32>
    %248 = vector.broadcast %247 : vector<1x16xf32> to vector<8x16xf32>
    %249 = arith.addf %246, %248 : vector<8x16xf32>
    %c10_115 = arith.constant 10 : index
    %c0_116 = arith.constant 0 : index
    %c0_117 = arith.constant 0 : index
    %250 = vector.load %arg5[%c10_115, %c0_116, %c0_117] : memref<12x32x16xbf16, #tpu.memory_space<vmem>>, vector<1x32x16xbf16>
    %251 = vector.shape_cast %250 : vector<1x32x16xbf16> to vector<32x16xbf16>
    %cst_118 = arith.constant dense<0.000000e+00> : vector<8x16xf32>
    %252 = tpu.matmul %205, %251, %cst_118 {dimension_numbers = #tpu.dot_dimension_numbers<[1], [0], [0], [1], [0, 0, 1, 1], [], []>} : vector<8x32xbf16>, vector<32x16xbf16>, vector<8x16xf32> -> vector<8x16xf32>
    %c20 = arith.constant 20 : index
    %c0_119 = arith.constant 0 : index
    %253 = vector.load %arg4[%c20, %c0_119] : memref<32x128xf32, #tpu.memory_space<vmem>>, vector<1x16xf32>
    %254 = vector.broadcast %253 : vector<1x16xf32> to vector<8x16xf32>
    %255 = arith.addf %252, %254 : vector<8x16xf32>
    %c11_120 = arith.constant 11 : index
    %c0_121 = arith.constant 0 : index
    %c0_122 = arith.constant 0 : index
    %256 = vector.load %arg5[%c11_120, %c0_121, %c0_122] : memref<12x32x16xbf16, #tpu.memory_space<vmem>>, vector<1x32x16xbf16>
    %257 = vector.shape_cast %256 : vector<1x32x16xbf16> to vector<32x16xbf16>
    %cst_123 = arith.constant dense<0.000000e+00> : vector<8x16xf32>
    %258 = tpu.matmul %205, %257, %cst_123 {dimension_numbers = #tpu.dot_dimension_numbers<[1], [0], [0], [1], [0, 0, 1, 1], [], []>} : vector<8x32xbf16>, vector<32x16xbf16>, vector<8x16xf32> -> vector<8x16xf32>
    %c21 = arith.constant 21 : index
    %c0_124 = arith.constant 0 : index
    %259 = vector.load %arg4[%c21, %c0_124] : memref<32x128xf32, #tpu.memory_space<vmem>>, vector<1x16xf32>
    %260 = vector.broadcast %259 : vector<1x16xf32> to vector<8x16xf32>
    %261 = arith.addf %258, %260 : vector<8x16xf32>
    %262 = arith.truncf %249 : vector<8x16xf32> to vector<8x16xbf16>
    %263 = arith.truncf %255 : vector<8x16xf32> to vector<8x16xbf16>
    %cst_125 = arith.constant dense<0.000000e+00> : vector<8x8xf32>
    %264 = tpu.matmul %262, %263, %cst_125 {dimension_numbers = #tpu.dot_dimension_numbers<[1], [1], [0], [0], [0, 0, 1, 0], [], []>} : vector<8x16xbf16>, vector<8x16xbf16>, vector<8x8xf32> -> vector<8x8xf32>
    %cst_126 = arith.constant 2.500000e-01 : f32
    %265 = vector.broadcast %cst_126 : f32 to vector<8x8xf32>
    %266 = arith.mulf %264, %265 : vector<8x8xf32>
    %267 = vector.broadcast %5 : vector<1x8xf32> to vector<8x8xf32>
    %268 = arith.addf %266, %267 : vector<8x8xf32>
    %cst_127 = arith.constant dense<0xFF800000> : vector<8xf32>
    %269 = vector.multi_reduction <maximumf>, %268, %cst_127 [1] : vector<8x8xf32> to vector<8xf32>
    %270 = vector.shape_cast %269 : vector<8xf32> to vector<8x1xf32>
    %271 = vector.broadcast %270 : vector<8x1xf32> to vector<8x8xf32>
    %272 = arith.subf %268, %271 : vector<8x8xf32>
    %273 = math.exp %272 : vector<8x8xf32>
    %cst_128 = arith.constant dense<0.000000e+00> : vector<8xf32>
    %274 = vector.multi_reduction <add>, %273, %cst_128 [1] : vector<8x8xf32> to vector<8xf32>
    %275 = vector.shape_cast %274 : vector<8xf32> to vector<8x1xf32>
    %276 = tpu.reciprocal %275 {approx = true} : vector<8x1xf32> -> vector<8x1xf32>
    %277 = vector.broadcast %276 : vector<8x1xf32> to vector<8x8xf32>
    %278 = arith.mulf %273, %277 : vector<8x8xf32>
    %279 = arith.truncf %278 : vector<8x8xf32> to vector<8x8xbf16>
    %280 = arith.truncf %261 : vector<8x16xf32> to vector<8x16xbf16>
    %cst_129 = arith.constant dense<0.000000e+00> : vector<8x16xf32>
    %281 = tpu.matmul %279, %280, %cst_129 {dimension_numbers = #tpu.dot_dimension_numbers<[1], [0], [0], [1], [0, 0, 1, 1], [], []>} : vector<8x8xbf16>, vector<8x16xbf16>, vector<8x16xf32> -> vector<8x16xf32>
    %282 = tpu.concatenate %243, %281 in 1 : vector<8x16xf32>, vector<8x16xf32> -> vector<8x32xf32>
    %283 = arith.truncf %282 : vector<8x32xf32> to vector<8x32xbf16>
    %c1_130 = arith.constant 1 : index
    %c0_131 = arith.constant 0 : index
    %c0_132 = arith.constant 0 : index
    %284 = vector.load %arg6[%c1_130, %c0_131, %c0_132] : memref<2x32x32xbf16, #tpu.memory_space<vmem>>, vector<1x32x32xbf16>
    %285 = vector.shape_cast %284 : vector<1x32x32xbf16> to vector<32x32xbf16>
    %cst_133 = arith.constant dense<0.000000e+00> : vector<8x32xf32>
    %286 = tpu.matmul %283, %285, %cst_133 {dimension_numbers = #tpu.dot_dimension_numbers<[1], [0], [0], [1], [0, 0, 1, 1], [], []>} : vector<8x32xbf16>, vector<32x32xbf16>, vector<8x32xf32> -> vector<8x32xf32>
    %c22 = arith.constant 22 : index
    %c0_134 = arith.constant 0 : index
    %287 = vector.load %arg4[%c22, %c0_134] : memref<32x128xf32, #tpu.memory_space<vmem>>, vector<1x32xf32>
    %288 = vector.broadcast %287 : vector<1x32xf32> to vector<8x32xf32>
    %289 = arith.addf %286, %288 : vector<8x32xf32>
    %290 = arith.addf %289, %204 : vector<8x32xf32>
    %c25 = arith.constant 25 : index
    %c0_135 = arith.constant 0 : index
    %291 = vector.load %arg4[%c25, %c0_135] : memref<32x128xf32, #tpu.memory_space<vmem>>, vector<1x32xf32>
    %c26 = arith.constant 26 : index
    %c0_136 = arith.constant 0 : index
    %292 = vector.load %arg4[%c26, %c0_136] : memref<32x128xf32, #tpu.memory_space<vmem>>, vector<1x32xf32>
    %cst_137 = arith.constant dense<0.000000e+00> : vector<8xf32>
    %293 = vector.multi_reduction <add>, %290, %cst_137 [1] : vector<8x32xf32> to vector<8xf32>
    %294 = vector.shape_cast %293 : vector<8xf32> to vector<8x1xf32>
    %cst_138 = arith.constant 3.125000e-02 : f32
    %295 = vector.broadcast %cst_138 : f32 to vector<8x1xf32>
    %296 = arith.mulf %294, %295 : vector<8x1xf32>
    %297 = vector.broadcast %296 : vector<8x1xf32> to vector<8x32xf32>
    %298 = arith.subf %290, %297 : vector<8x32xf32>
    %299 = arith.mulf %298, %298 : vector<8x32xf32>
    %cst_139 = arith.constant dense<0.000000e+00> : vector<8xf32>
    %300 = vector.multi_reduction <add>, %299, %cst_139 [1] : vector<8x32xf32> to vector<8xf32>
    %301 = vector.shape_cast %300 : vector<8xf32> to vector<8x1xf32>
    %cst_140 = arith.constant 3.125000e-02 : f32
    %302 = vector.broadcast %cst_140 : f32 to vector<8x1xf32>
    %303 = arith.mulf %301, %302 : vector<8x1xf32>
    %cst_141 = arith.constant 9.99999996E-13 : f32
    %304 = vector.broadcast %cst_141 : f32 to vector<8x1xf32>
    %305 = arith.addf %303, %304 : vector<8x1xf32>
    %306 = math.rsqrt %305 : vector<8x1xf32>
    %307 = vector.broadcast %306 : vector<8x1xf32> to vector<8x32xf32>
    %308 = arith.mulf %298, %307 : vector<8x32xf32>
    %309 = vector.broadcast %291 : vector<1x32xf32> to vector<8x32xf32>
    %310 = arith.mulf %308, %309 : vector<8x32xf32>
    %311 = vector.broadcast %292 : vector<1x32xf32> to vector<8x32xf32>
    %312 = arith.addf %310, %311 : vector<8x32xf32>
    %313 = arith.truncf %312 : vector<8x32xf32> to vector<8x32xbf16>
    %c1_142 = arith.constant 1 : index
    %c0_143 = arith.constant 0 : index
    %c0_144 = arith.constant 0 : index
    %314 = vector.load %arg7[%c1_142, %c0_143, %c0_144] : memref<2x32x64xbf16, #tpu.memory_space<vmem>>, vector<1x32x64xbf16>
    %315 = vector.shape_cast %314 : vector<1x32x64xbf16> to vector<32x64xbf16>
    %cst_145 = arith.constant dense<0.000000e+00> : vector<8x64xf32>
    %316 = tpu.matmul %313, %315, %cst_145 {dimension_numbers = #tpu.dot_dimension_numbers<[1], [0], [0], [1], [0, 0, 1, 1], [], []>} : vector<8x32xbf16>, vector<32x64xbf16>, vector<8x64xf32> -> vector<8x64xf32>
    %c23 = arith.constant 23 : index
    %c0_146 = arith.constant 0 : index
    %317 = vector.load %arg4[%c23, %c0_146] : memref<32x128xf32, #tpu.memory_space<vmem>>, vector<1x64xf32>
    %318 = vector.broadcast %317 : vector<1x64xf32> to vector<8x64xf32>
    %319 = arith.addf %316, %318 : vector<8x64xf32>
    %cst_147 = arith.constant 5.000000e-01 : f32
    %320 = vector.broadcast %cst_147 : f32 to vector<8x64xf32>
    %321 = arith.mulf %319, %320 : vector<8x64xf32>
    %cst_148 = arith.constant 2.000000e+00 : f32
    %322 = math.sqrt %cst_148 : f32
    %323 = vector.broadcast %322 : f32 to vector<8x64xf32>
    %324 = arith.divf %319, %323 : vector<8x64xf32>
    %325 = math.erf %324 : vector<8x64xf32>
    %cst_149 = arith.constant 1.000000e+00 : f32
    %326 = vector.broadcast %cst_149 : f32 to vector<8x64xf32>
    %327 = arith.addf %326, %325 : vector<8x64xf32>
    %328 = arith.mulf %321, %327 : vector<8x64xf32>
    %329 = arith.truncf %328 : vector<8x64xf32> to vector<8x64xbf16>
    %c1_150 = arith.constant 1 : index
    %c0_151 = arith.constant 0 : index
    %c0_152 = arith.constant 0 : index
    %330 = vector.load %arg8[%c1_150, %c0_151, %c0_152] : memref<2x64x32xbf16, #tpu.memory_space<vmem>>, vector<1x64x32xbf16>
    %331 = vector.shape_cast %330 : vector<1x64x32xbf16> to vector<64x32xbf16>
    %cst_153 = arith.constant dense<0.000000e+00> : vector<8x32xf32>
    %332 = tpu.matmul %329, %331, %cst_153 {dimension_numbers = #tpu.dot_dimension_numbers<[1], [0], [0], [1], [0, 0, 1, 1], [], []>} : vector<8x64xbf16>, vector<64x32xbf16>, vector<8x32xf32> -> vector<8x32xf32>
    %c24 = arith.constant 24 : index
    %c0_154 = arith.constant 0 : index
    %333 = vector.load %arg4[%c24, %c0_154] : memref<32x128xf32, #tpu.memory_space<vmem>>, vector<1x32xf32>
    %334 = vector.broadcast %333 : vector<1x32xf32> to vector<8x32xf32>
    %335 = arith.addf %332, %334 : vector<8x32xf32>
    %336 = arith.addf %335, %312 : vector<8x32xf32>
    %c27 = arith.constant 27 : index
    %c0_155 = arith.constant 0 : index
    %337 = vector.load %arg4[%c27, %c0_155] : memref<32x128xf32, #tpu.memory_space<vmem>>, vector<1x32xf32>
    %c28 = arith.constant 28 : index
    %c0_156 = arith.constant 0 : index
    %338 = vector.load %arg4[%c28, %c0_156] : memref<32x128xf32, #tpu.memory_space<vmem>>, vector<1x32xf32>
    %cst_157 = arith.constant dense<0.000000e+00> : vector<8xf32>
    %339 = vector.multi_reduction <add>, %336, %cst_157 [1] : vector<8x32xf32> to vector<8xf32>
    %340 = vector.shape_cast %339 : vector<8xf32> to vector<8x1xf32>
    %cst_158 = arith.constant 3.125000e-02 : f32
    %341 = vector.broadcast %cst_158 : f32 to vector<8x1xf32>
    %342 = arith.mulf %340, %341 : vector<8x1xf32>
    %343 = vector.broadcast %342 : vector<8x1xf32> to vector<8x32xf32>
    %344 = arith.subf %336, %343 : vector<8x32xf32>
    %345 = arith.mulf %344, %344 : vector<8x32xf32>
    %cst_159 = arith.constant dense<0.000000e+00> : vector<8xf32>
    %346 = vector.multi_reduction <add>, %345, %cst_159 [1] : vector<8x32xf32> to vector<8xf32>
    %347 = vector.shape_cast %346 : vector<8xf32> to vector<8x1xf32>
    %cst_160 = arith.constant 3.125000e-02 : f32
    %348 = vector.broadcast %cst_160 : f32 to vector<8x1xf32>
    %349 = arith.mulf %347, %348 : vector<8x1xf32>
    %cst_161 = arith.constant 9.99999996E-13 : f32
    %350 = vector.broadcast %cst_161 : f32 to vector<8x1xf32>
    %351 = arith.addf %349, %350 : vector<8x1xf32>
    %352 = math.rsqrt %351 : vector<8x1xf32>
    %353 = vector.broadcast %352 : vector<8x1xf32> to vector<8x32xf32>
    %354 = arith.mulf %344, %353 : vector<8x32xf32>
    %355 = vector.broadcast %337 : vector<1x32xf32> to vector<8x32xf32>
    %356 = arith.mulf %354, %355 : vector<8x32xf32>
    %357 = vector.broadcast %338 : vector<1x32xf32> to vector<8x32xf32>
    %358 = arith.addf %356, %357 : vector<8x32xf32>
    %359 = arith.truncf %358 : vector<8x32xf32> to vector<8x32xbf16>
    %c0_162 = arith.constant 0 : index
    %c0_163 = arith.constant 0 : index
    %360 = vector.load %arg9[%c0_162, %c0_163] : memref<32x128xbf16, #tpu.memory_space<vmem>>, vector<32x128xbf16>
    %cst_164 = arith.constant dense<0.000000e+00> : vector<8x128xf32>
    %361 = tpu.matmul %359, %360, %cst_164 {dimension_numbers = #tpu.dot_dimension_numbers<[1], [0], [0], [1], [0, 0, 1, 1], [], []>} : vector<8x32xbf16>, vector<32x128xbf16>, vector<8x128xf32> -> vector<8x128xf32>
    %c2_165 = arith.constant 2 : index
    %c0_166 = arith.constant 0 : index
    %362 = vector.load %arg4[%c2_165, %c0_166] : memref<32x128xf32, #tpu.memory_space<vmem>>, vector<1x128xf32>
    %363 = vector.broadcast %362 : vector<1x128xf32> to vector<8x128xf32>
    %364 = arith.addf %361, %363 : vector<8x128xf32>
    %c0_167 = arith.constant 0 : index
    %c0_168 = arith.constant 0 : index
    %c0_169 = arith.constant 0 : index
    %365 = vector.load %arg10[%c0_167, %c0_168, %c0_169] : memref<1x8x128xf32, #tpu.memory_space<vmem>>, vector<1x8x128xf32>
    %366 = vector.shape_cast %365 : vector<1x8x128xf32> to vector<8x128xf32>
    %367 = vector.shape_cast %364 : vector<8x128xf32> to vector<1x8x128xf32>
    tpu.vector_store %arg10[%c0_167, %c0_168, %c0_169], %367 {strides = array<i32>} : memref<1x8x128xf32, #tpu.memory_space<vmem>>, vector<1x8x128xf32>,
    return
  }
  func.func @transform_0(%arg0: i32) -> (i32, i32, i32) {
    %c0_i32 = arith.constant 0 : i32
    %c0_i32_0 = arith.constant 0 : i32
    %c0_i32_1 = arith.constant 0 : i32
    return %arg0, %c0_i32, %c0_i32_0 : i32, i32, i32
  }
  func.func @transform_1(%arg0: i32) -> (i32, i32, i32) {
    %c0_i32 = arith.constant 0 : i32
    %c0_i32_0 = arith.constant 0 : i32
    %c0_i32_1 = arith.constant 0 : i32
    return %arg0, %c0_i32, %c0_i32_0 : i32, i32, i32
  }
  func.func @transform_2(%arg0: i32) -> (i32, i32) {
    %c0_i32 = arith.constant 0 : i32
    %c0_i32_0 = arith.constant 0 : i32
    %c0_i32_1 = arith.constant 0 : i32
    return %c0_i32, %c0_i32_0 : i32, i32
  }
  func.func @transform_3(%arg0: i32) -> (i32, i32) {
    %c0_i32 = arith.constant 0 : i32
    %c0_i32_0 = arith.constant 0 : i32
    %c0_i32_1 = arith.constant 0 : i32
    return %c0_i32, %c0_i32_0 : i32, i32
  }
  func.func @transform_4(%arg0: i32) -> (i32, i32, i32) {
    %c0_i32 = arith.constant 0 : i32
    %c0_i32_0 = arith.constant 0 : i32
    %c0_i32_1 = arith.constant 0 : i32
    %c0_i32_2 = arith.constant 0 : i32
    return %c0_i32, %c0_i32_0, %c0_i32_1 : i32, i32, i32
  }
  func.func @transform_5(%arg0: i32) -> (i32, i32, i32) {
    %c0_i32 = arith.constant 0 : i32
    %c0_i32_0 = arith.constant 0 : i32
    %c0_i32_1 = arith.constant 0 : i32
    %c0_i32_2 = arith.constant 0 : i32
    return %c0_i32, %c0_i32_0, %c0_i32_1 : i32, i32, i32
  }
  func.func @transform_6(%arg0: i32) -> (i32, i32, i32) {
    %c0_i32 = arith.constant 0 : i32
    %c0_i32_0 = arith.constant 0 : i32
    %c0_i32_1 = arith.constant 0 : i32
    %c0_i32_2 = arith.constant 0 : i32
    return %c0_i32, %c0_i32_0, %c0_i32_1 : i32, i32, i32
  }
  func.func @transform_7(%arg0: i32) -> (i32, i32, i32) {
    %c0_i32 = arith.constant 0 : i32
    %c0_i32_0 = arith.constant 0 : i32
    %c0_i32_1 = arith.constant 0 : i32
    %c0_i32_2 = arith.constant 0 : i32
    return %c0_i32, %c0_i32_0, %c0_i32_1 : i32, i32, i32
  }
  func.func @transform_8(%arg0: i32) -> (i32, i32) {
    %c0_i32 = arith.constant 0 : i32
    %c0_i32_0 = arith.constant 0 : i32
    %c0_i32_1 = arith.constant 0 : i32
    return %c0_i32, %c0_i32_0 : i32, i32
  }
  func.func @transform_9(%arg0: i32) -> (i32, i32, i32) {
    %c0_i32 = arith.constant 0 : i32
    %c0_i32_0 = arith.constant 0 : i32
    %c0_i32_1 = arith.constant 0 : i32
    return %arg0, %c0_i32, %c0_i32_0 : i32, i32, i32
  }
}

</mosaic_0001>

<bundles_post_ra>
// kernel: super_bert_qa_forward.1
= control target key start
LH: loop header
LB: loop body
LE: loop exit
PB: predicated region body
PF: predicated region fallthrough
CT: control target
= control target key end

     0   :  { %s3042_s30 = smov 0   ;;  %s3523_s0 = inlined_call_operand.vmem [shape: s32[2,8,2], index: 0, kind: input, shape index: {}]   ;;  %s3524_s1 = inlined_call_operand.vmem [shape: f32[2,1,8], index: 1, kind: input, shape index: {}]   ;;  %s3525_s2 = inlined_call_operand.vmem [shape: f32[110,32], index: 2, kind: input, shape index: {}]   ;;  %s3526_s3 = inlined_call_operand.vmem [shape: f32[32,128], index: 3, kind: input, shape index: {}]   ;;  %s3527_s4 = inlined_call_operand.vmem [shape: bf16[12,32,16], index: 4, kind: input, shape index: {}]   ;;  %s3528_s5 = inlined_call_operand.vmem [shape: bf16[2,32,32], index: 5, kind: input, shape index: {}]   ;;  %s3529_s6 = inlined_call_operand.vmem [shape: bf16[2,32,64], index: 6, kind: input, shape index: {}]   ;;  %s3530_s7 = inlined_call_operand.vmem [shape: bf16[2,64,32], index: 7, kind: input, shape index: {}]   ;;  %s3531_s8 = inlined_call_operand.vmem [shape: bf16[32,128], index: 8, kind: input, shape index: {}]   ;;  %s3532_s9 = inlined_call_operand.vmem [shape: f32[2,8,128], index: 9, kind: output, shape index: {}]  }
   0x1 LB: > { %s2362_s10 = sadd.s32 4294967295, %s2983_s30   ;;  %p2366_p0 = scmp.ge.s32.totalorder %s2983_s30, 1  ;;  %s2983_s30 = sphi %s3042_s30, %s19_s30  }
   0x2   : > { %p294_p1 = scmp.lt.s32.totalorder %s2983_s30, 3 }
   0x4   : > { %p295_p2 = pnand %p2366_p0, %p294_p1 }
   0x5   : > { %p331_p3 = scmp.lt.s32.totalorder (!%p295_p2), %s2362_s10, 1  ;;  %v369_v0 = vld [vmem:[%s3525_s2] sm:$0xff] (!%p295_p2)  ;;  %v370_v1 = vld [vmem:[%s3525_s2 + $0x8] sm:$0xff] (!%p295_p2)  ;;  %v2985_v2 = vmov (!%p295_p2), 0   ;;  %v2986_v3 = vmov (!%p295_p2), 0.0|0.0   ;;  %v371_v5 = vld [vmem:[%s3525_s2 + $0x10] sm:$0xff] (!%p295_p2)  ;;  %v345_v27 = vlaneseq (!%p295_p2) }
   0x6   : > { %298 = sbr.rel (%p295_p2) target bundleno = 7196 (0x1c1c), region = 56  ;;  %2903 = vset.pattern.permute.xlu0 (!%p295_p2), %v2985_v2  ;;  %2866 = vmatprep.subr.bf16.mxu0 (!%p295_p2), %v2986_v3  ;;  %v2867_v4 = vpack.c.bf16 (!%p295_p2), %v370_v1, %v369_v0  ;;  %v372_v6 = vld [vmem:[%s3525_s2 + $0x18] sm:$0xff] (!%p295_p2)  ;;  %v2987_v7 = vmov (!%p295_p2), 0.0   ;;  %v373_v9 = vld [vmem:[%s3525_s2 + $0x20] sm:$0xff] (!%p295_p2)  ;;  %v374_v10 = vld [vmem:[%s3525_s2 + $0x28] sm:$0xff] (!%p295_p2)  ;;  %v2988_v16 = vmov (!%p295_p2), 1  }
   0x7   : > { %2658 = vmatprep.subr.bf16.mxu1 (!%p295_p2), %v2987_v7  ;;  %v2870_v8 = vpack.c.bf16 (!%p295_p2), %v372_v6, %v371_v5  ;;  %v2873_v12 = vpack.c.bf16 (!%p295_p2), %v374_v10, %v373_v9  ;;  %v375_v14 = vld [vmem:[%s3525_s2 + $0x30] sm:$0xff] (!%p295_p2)  ;;  %v376_v15 = vld [vmem:[%s3525_s2 + $0x38] sm:$0xff] (!%p295_p2)  ;;  %v377_v18 = vld [vmem:[%s3525_s2 + $0x40] sm:$0xff] (!%p295_p2)  ;;  %vm387_vm0 = vcmask (!%p295_p2), 1045504   ;;  %vm2989_vm1 = vmmov (!%p295_p2), 1   ;;  %s2991_s17 = smov (!%p295_p2), 16  }
   0x8   : > { %2868 = vmatpush3.bf16.msra.mxu0 (!%p295_p2), %v2867_v4  ;;  %v2876_v17 = vpack.c.bf16 (!%p295_p2), %v376_v15, %v375_v14  ;;  %v378_v19 = vld [vmem:[%s3525_s2 + $0x48] sm:$0xff] (!%p295_p2)  ;;  %v379_v20 = vld [vmem:[%s3525_s2 + $0x50] sm:$0xff] (!%p295_p2)  ;;  %v380_v21 = vld [vmem:[%s3525_s2 + $0x58] sm:$0xff] (!%p295_p2)  ;;  %vm2990_vm3 = vmmov (!%p295_p2), 0   ;;  %v348_v28 = vshrl.u32 (!%p295_p2), %v345_v27, 7  ;;  %v346_v30 = vand.u32 (!%p295_p2), 127, %v345_v27 }
   0x9   : > { %2869 = vmatprep.subr.bf16.mxu0 (!%p295_p2), %v2986_v3  ;;  %v2879_v22 = vpack.c.bf16 (!%p295_p2), %v378_v19, %v377_v18  ;;  %vm2886_vm2 = vmpackc.low (!%p295_p2), %vm387_vm0, %vm2989_vm1  ;;  %2655 = vmatprep.mubr.msk.f32.mxu0 (!%p295_p2), %vm2990_vm3, %v2987_v7  ;;  %v381_v23 = vld [vmem:[%s3525_s2 + $0x60] sm:$0xff] (!%p295_p2)  ;;  %v382_v24 = vld [vmem:[%s3525_s2 + $0x68] sm:$0x3f] (!%p295_p2)  ;;  %v2882_v25 = vpack.c.bf16 (!%p295_p2), %v380_v21, %v379_v20  ;;  %vm383_vm7 = vcmask (!%p295_p2), 900096   ;;  %vm463_vm8 = vcmask (!%p295_p2), 261120  }
   0xa   : > { %2662 = vmatprep.mubr.msk.bf16.mxu1 (!%p295_p2), %vm2990_vm3, %v2987_v7  ;;  %v2885_v26 = vpack.c.bf16 (!%p295_p2), %v382_v24, %v381_v23  ;;  %v363_v29 = vadd.s32 (!%p295_p2), 100, %v348_v28  ;;  %v2905_v47 = vld [vmem:[%s3527_s4] sm:$0xff] (!%p295_p2)   ;;  %v2906_v48 = vld [vmem:[%s3527_s4 + $0x8] sm:$0xff] (!%p295_p2)   ;;  %v2907_v58 = vld [vmem:[%s3527_s4 + $0x10] sm:$0xff] (!%p295_p2)   ;;  %vm678_vm9 = vcmask (!%p295_p2), 130048   ;;  %vm750_vm10 = vcmask (!%p295_p2), 1043456  }
   0xb   : > { %2659 = vmatpush3.bf16.msra.mxu1 (!%p295_p2), %v2905_v47  ;;  %v2374_v53 = vld [vmem:[%s3526_s3] ss:$0 sm:$0xff] (!%p295_p2)  ;;  %v2375_v55 = vld [vmem:[%s3526_s3 + $0x1] ss:$0 sm:$0xff] (!%p295_p2)  ;;  %v2908_v60 = vld [vmem:[%s3527_s4 + $0x18] sm:$0xff] (!%p295_p2)   ;;  %vm733_vm11 = vcmask (!%p295_p2), 64512  }
   0xc   : > { %2871 = vmatpush3.bf16.msra.mxu0 (!%p295_p2), %v2870_v8  ;;  %v364_v32 = vadd.s32 (!%p295_p2), 2, %v363_v29  ;;  %2660 = vmatprep.subr.bf16.mxu1 (!%p295_p2), %v2987_v7  ;;  %v2909_v61 = vld [vmem:[%s3527_s4 + $0x20] sm:$0xff] (!%p295_p2)   ;;  %v2910_v62 = vld [vmem:[%s3527_s4 + $0x28] sm:$0xff] (!%p295_p2)   ;;  %vm1294_vm12 = vcmask (!%p295_p2), 523264  }
   0xd   : > { %s3534_s10 = smov (!%p331_p3, %s2362_s10), 1  ;;  %2872 = vmatprep.subr.bf16.mxu0 %v2986_v3  ;;  %v2911_v19 = vld [vmem:[%s3527_s4 + $0x40] sm:$0xff]   ;;  %v2912_v24 = vld [vmem:[%s3527_s4 + $0x48] sm:$0xff]  }
   0xe   : > { %s2367_s19 = sshll.u32 %s3534_s10, 3  ;;  %vm365_vm5 = vcmp.eq.s32.totalorder %v346_v30, %v364_v32  ;;  %s337_s16 = scalar_lea.vmem %s3524_s1, %s3534_s10 }
   0xf   : > { %s334_s26 = scalar_lea.vmem %s3523_s0, %s2367_s19  ;;  %v2371_v35 = vsel %vm365_vm5, 1.0, %v2987_v7  ;;  %2661 = vmatpush3.bf16.msra.mxu1 %v2906_v48  ;;  %s341_s13 = scalar_lea.vmem %s3532_s9, %s2367_s19 }
  0x10   : > { %v343_v11 = vld [vmem:[%s334_s26] sm:$0xff]  ;;  %2874 = vmatpush3.bf16.msra.mxu0 %v2873_v12  ;;  %2666 = vmatprep.subr.bf16.mxu1 %v2987_v7 }
  0x11   : > { %350 = vperm.xlu0 %2903, %v343_v11   ;;  %v355_v13 = vadd.s32 100, %v343_v11  ;;  %2875 = vmatprep.subr.bf16.mxu0 %v2986_v3  ;;  %v2376_v11 = vld [vmem:[%s3526_s3 + $0x3] ss:$0 sm:$0xff] }
  0x14   : > { %2877 = vmatpush3.bf16.msra.mxu0 %v2876_v17 }
  0x15   : > { %2904 = vset.pattern.permute.xlu0 %v2988_v16  ;;  %2878 = vmatprep.subr.bf16.mxu0 %v2986_v3 }
  0x16   : > { %357 = vperm.xlu0 %2904, %v355_v13   ;;  %v2392_v13 = vld [vmem:[%s3526_s3 + $0x5] ss:$0 sm:$0xff] }
  0x18   : > { %2880 = vmatpush3.bf16.msra.mxu0 %v2879_v22 }
  0x19   : > { %2881 = vmatprep.subr.bf16.mxu0 %v2986_v3 }
  0x1c   : > { %2883 = vmatpush3.bf16.msra.mxu0 %v2882_v25  ;;  %v3193_v25 = vld [vmem:[%s337_s16] ss:$0 sm:$0xff] }
  0x1d   : > { %2884 = vmatprep.subr.bf16.mxu0 %v2986_v3  ;;  %v2384_v3 = vld [vmem:[%s3526_s3 + $0x4] ss:$0 sm:$0xff] }
  0x20   : > { %2887 = vmatpush3.bf16.msk.msra.mxu0 %vm2886_vm2, %v2885_v26 }
  0x21   : > { %2688 = vmatprep.subr.bf16.mxu0 %v2987_v7 }
  0x90   : > { %v351_v31 = vpop.permute.xlu0 %350 }
  0x91   : > { %vm352_vm4 = vcmp.eq.s32.totalorder %v346_v30, %v351_v31 }
  0x92   : > { %v2369_v34 = vsel %vm352_vm4, 1.0, %v2987_v7 }
  0x95   : > { %v358_v33 = vpop.permute.xlu0 %357 }
  0x96   : > { %vm359_vm6 = vcmp.eq.s32.totalorder %v346_v30, %v358_v33  ;;  %v2411_v33 = vld [vmem:[%s3526_s3 + $0x7] ss:$0 sm:$0xff] }
  0x97   : > { %v2370_v36 = vsel %vm359_vm6, 1.0, %v2987_v7 }
  0x98   : > { %v362_v37 = vadd.f32 %v2370_v36, %v2369_v34 }
  0x9a   : > { %v368_v38 = vadd.f32 %v2371_v35, %v362_v37 }
  0x9c   : > { %2656 = vmatmul.mubr.msk.f32.vlgmr.msra.gmra.mrb[0].mxu0 %vm383_vm7, %v368_v38 }
  0x9d   : > { %2690 = vmatprep.mubr.msk.bf16.mxu0 %vm2990_vm3, %v2987_v7 }
 0x16f   : > { %v457_v39 = vpop.f32.mrb[0].mxu0 }
 0x170   : > { %v2657_v40 = vpop.f32.mrb[1].mxu0  ;;  %v464_v41 = vsel %vm463_vm8, %v457_v39, 0.0 }
 0x171   : > { %465 = vadd.xlane.f32.xlu1 %v464_v41 }
 0x1fe   : > { %v466_v42 = vpop.xlane.xlu1 %465 }
 0x1ff   : > { %v467_v43 = vmul.f32 0.03125, %v466_v42 }
 0x201   : > { %v468_v44 = vsub.f32 %v457_v39, %v467_v43 }
 0x203   : > { %v469_v45 = vmul.f32 %v468_v44, %v468_v44 }
 0x205   : > { %v470_v46 = vsel %vm463_vm8, %v469_v45, 0.0 }
 0x206   : > { %471 = vadd.xlane.f32.xlu1 %v470_v46 }
 0x293   : > { %v472_v49 = vpop.xlane.xlu1 %471 }
 0x294   : > { %v473_v50 = vmul.f32 0.03125, %v472_v49  ;;  %v2913_v49 = vld [vmem:[%s3527_s4 + $0x30] sm:$0xff]  }
 0x296   : > { %v474_v51 = vadd.f32 1e-12, %v473_v50 }
 0x298   : > { %2947 = vrsqrt.f32 %v474_v51  ;;  %v2914_v51 = vld [vmem:[%s3527_s4 + $0x38] sm:$0xff]  }
 0x2a2   : > { %v2948_v52 = vpop.eup %2947 }
 0x2a3   : > { %v476_v54 = vmul.f32 %v2948_v52, %v468_v44  ;;  %v2915_v52 = vld [vmem:[%s3527_s4 + $0x50] sm:$0xff]  }
 0x2a5   : > { %v481_v56 = vmul.f32 %v2374_v53, %v476_v54  ;;  %v2916_v53 = vld [vmem:[%s3527_s4 + $0x58] sm:$0xff]  }
 0x2a7   : > { %v3127_v57 = vadd.f32 %v2375_v55, %v481_v56 }
 0x2a9   : > { %v3134_v59 = vpack.c.bf16 %v3127_v57, %v3127_v57 }
 0x2ab   : > { %2663 = vmatmul.mubr.msk.bf16.vlgmr.msra.gmra.mrb[0].mxu1 %vm463_vm8, %v3134_v59 }
 0x2ac   : > { %2667 = vmatpush3.bf16.msra.mxu1 %v2907_v58  ;;  %2670 = vmatprep.mubr.msk.bf16.mxu1 %vm2990_vm3, %v2987_v7 }
 0x2ad   : > { %2668 = vmatprep.subr.bf16.mxu1 %v2987_v7 }
 0x2b0   : > { %2669 = vmatpush3.bf16.msra.mxu1 %v2908_v60  ;;  %v2403_v60 = vld [vmem:[%s3526_s3 + $0x6] ss:$0 sm:$0xff] }
 0x2b1   : > { %2674 = vmatprep.subr.bf16.mxu1 %v2987_v7 }
 0x2b3   : > { %2671 = vmatmul.mubr.msk.bf16.vlgmr.msra.gmra.mrb[4].mxu1 %vm463_vm8, %v3134_v59 }
 0x2b4   : > { %2675 = vmatpush3.bf16.msra.mxu1 %v2909_v61  ;;  %2678 = vmatprep.mubr.msk.bf16.mxu1 %vm2990_vm3, %v2987_v7 }
 0x2b5   : > { %2676 = vmatprep.subr.bf16.mxu1 %v2987_v7 }
 0x2b8   : > { %2677 = vmatpush3.bf16.msra.mxu1 %v2910_v62 }
 0x2b9   : > { %2682 = vmatprep.subr.bf16.mxu1 %v2987_v7 }
 0x2bb   : > { %2679 = vmatmul.mubr.msk.bf16.vlgmr.msra.gmra.mrb[8].mxu1 %vm463_vm8, %v3134_v59 }
 0x2bc   : > { %2684 = vmatprep.mubr.msk.bf16.mxu1 %vm2990_vm3, %v2987_v7 }
 0x37e   : > { %v546_v63 = vpop.f32.mrb[0].mxu1 }
 0x37f   : > { %v2664_v0 = vpop.f32.mrb[1].mxu1  ;;  %v547_v14 = vadd.f32 %v2376_v11, %v546_v63 }
 0x380   : > { %v549_v1 = vpop.f32.mrb[2].mxu1 }
 0x381   : > { %v2665_v2 = vpop.f32.mrb[3].mxu1  ;;  %v676_v20 = vpack.c.bf16 %v547_v14, %v547_v14 }
 0x386   : > { %v608_v4 = vpop.f32.mrb[4].mxu1 }
 0x387   : > { %v609_v5 = vadd.f32 %v2384_v3, %v608_v4  ;;  %v2672_v6 = vpop.f32.mrb[5].mxu1 }
 0x388   : > { %v611_v8 = vpop.f32.mrb[6].mxu1 }
 0x389   : > { %v677_v9 = vpack.c.bf16 %v609_v5, %v609_v5  ;;  %v2673_v10 = vpop.f32.mrb[7].mxu1 }
 0x38b   : > { %v683_v12 = vsel %vm678_vm9, %v677_v9, 0 }
 0x38c   : > { %2683 = vmatpush3.bf16.xpose.msra.mxu1 %v683_v12 }
 0x38d   : > { %2702 = vmatprep.subr.bf16.mxu1 %v2987_v7 }
 0x38e   : > { %v670_v15 = vpop.f32.mrb[8].mxu1 }
 0x38f   : > { %v671_v16 = vadd.f32 %v2392_v13, %v670_v15  ;;  %v2680_v17 = vpop.f32.mrb[9].mxu1 }
 0x390   : > { %v673_v18 = vpop.f32.mrb[10].mxu1 }
 0x391   : > { %v746_v21 = vpack.c.bf16 %v671_v16, %v671_v16  ;;  %v2681_v22 = vpop.f32.mrb[11].mxu1 }
 0x393   : > { %v752_v23 = vsel %vm750_vm10, %v746_v21, 0  ;;  %2685 = vmatmul.mubr.msk.bf16.vlgmr.msra.gmra.mrb[12].mxu1 %vm678_vm9, %v676_v20 }
 0x394   : > { %2689 = vmatpush3.bf16.msra.mxu0 %v752_v23  ;;  %2703 = vmatpush3.bf16.msra.mxu1 %v2911_v19 }
 0x395   : > { %2704 = vmatprep.subr.bf16.mxu1 %v2987_v7  ;;  %2706 = vmatprep.mubr.msk.bf16.mxu1 %vm2990_vm3, %v2987_v7 }
 0x396   : > { %2694 = vmatprep.subr.bf16.mxu0 %v2987_v7 }
 0x398   : > { %2705 = vmatpush3.bf16.msra.mxu1 %v2912_v24 }
 0x399   : > { %2718 = vmatprep.subr.bf16.mxu1 %v2987_v7 }
 0x39b   : > { %2707 = vmatmul.mubr.msk.bf16.vlgmr.msra.gmra.mrb[16].mxu1 %vm463_vm8, %v3134_v59 }
 0x39c   : > { %2720 = vmatprep.mubr.msk.bf16.mxu1 %vm2990_vm3, %v2987_v7 }
 0x466   : > { %v719_v26 = vpop.f32.mrb[12].mxu1 }
 0x467   : > { %v725_v27 = vmul.f32 0.25, %v719_v26  ;;  %v2686_v28 = vpop.f32.mrb[13].mxu1 }
 0x468   : > { %v722_v29 = vpop.f32.mrb[14].mxu1  ;;  %v2917_v28 = vld [vmem:[%s3528_s5] sm:$0xff]  }
 0x469   : > { %v2687_v30 = vpop.f32.mrb[15].mxu1  ;;  %v732_v31 = vadd.f32 %v3193_v25, %v725_v27  ;;  %v2918_v29 = vld [vmem:[%s3528_s5 + $0x8] sm:$0xff]  }
 0x46b   : > { %v734_v32 = vsel %vm733_vm11, %v732_v31, -inf }
 0x46c   : > { %735 = vmax.xlane.f32.xlu1 %v734_v32 }
 0x46e   : > { %v912_v34 = vpop.f32.mrb[16].mxu1 }
 0x46f   : > { %v913_v35 = vadd.f32 %v2411_v33, %v912_v34  ;;  %v2708_v36 = vpop.f32.mrb[17].mxu1 }
 0x470   : > { %v915_v37 = vpop.f32.mrb[18].mxu1 }
 0x471   : > { %v981_v38 = vpack.c.bf16 %v913_v35, %v913_v35  ;;  %v2709_v39 = vpop.f32.mrb[19].mxu1  ;;  %v2425_v37 = vld [vmem:[%s3526_s3 + $0x9] ss:$0 sm:$0xff] }
 0x473   : > { %v986_v40 = vsel %vm678_vm9, %v981_v38, 0 }
 0x474   : > { %2719 = vmatpush3.bf16.xpose.msra.mxu1 %v986_v40 }
 0x475   : > { %2730 = vmatprep.subr.bf16.mxu1 %v2987_v7 }
 0x4f9   : > { %v736_v41 = vpop.xlane.xlu1 %735 }
 0x4fa   : > { %v737_v42 = vsub.f32 %v732_v31, %v736_v41 }
 0x4fc   : > { %v738_v43 = vmul.f32 1.442695, %v737_v42 }
 0x4fe   : > { %2949 = vpow2.f32 %v738_v43 }
 0x508   : > { %v2950_v44 = vpop.eup %2949 }
 0x509   : > { %v740_v45 = vsel %vm733_vm11, %v2950_v44, 0.0 }
 0x50a   : > { %741 = vadd.xlane.f32.xlu0 %v740_v45 }
 0x597   : > { %v742_v46 = vpop.xlane.xlu0 %741 }
 0x598   : > { %2951 = vrcp.f32 %v742_v46 }
 0x5a2   : > { %v2952_v47 = vpop.eup %2951 }
 0x5a3   : > { %v744_v48 = vmul.f32 %v2952_v47, %v2950_v44 }
 0x5a5   : > { %v745_v50 = vpack.c.bf16 %v744_v48, %v744_v48 }
 0x5a7   : > { %2691 = vmatmul.mubr.msk.bf16.vlgmr.msra.gmra.mrb[4].mxu0 %vm733_vm11, %v745_v50  ;;  %v2919_v50 = vld [vmem:[%s3529_s6] sm:$0xff]  }
 0x5a8   : > { %2695 = vmatpush3.bf16.msra.mxu0 %v2913_v49  ;;  %2698 = vmatprep.mubr.msk.bf16.mxu0 %vm2990_vm3, %v2987_v7 }
 0x5a9   : > { %2696 = vmatprep.subr.bf16.mxu0 %v2987_v7 }
 0x5ac   : > { %2697 = vmatpush3.bf16.msra.mxu0 %v2914_v51 }
 0x5ad   : > { %2710 = vmatprep.subr.bf16.mxu0 %v2987_v7 }
 0x5af   : > { %2699 = vmatmul.mubr.msk.bf16.vlgmr.msra.gmra.mrb[8].mxu0 %vm463_vm8, %v3134_v59 }
 0x5b0   : > { %2711 = vmatpush3.bf16.msra.mxu0 %v2915_v52  ;;  %2714 = vmatprep.mubr.msk.bf16.mxu0 %vm2990_vm3, %v2987_v7 }
 0x5b1   : > { %2712 = vmatprep.subr.bf16.mxu0 %v2987_v7 }
 0x5b4   : > { %2713 = vmatpush3.bf16.msra.mxu0 %v2916_v53 }
 0x5b5   : > { %2724 = vmatprep.subr.bf16.mxu0 %v2987_v7 }
 0x5b7   : > { %2715 = vmatmul.mubr.msk.bf16.vlgmr.msra.gmra.mrb[12].mxu0 %vm463_vm8, %v3134_v59  ;;  %v2419_v59 = vld [vmem:[%s3526_s3 + $0x8] ss:$0 sm:$0xff] }
 0x5b8   : > { %2726 = vmatprep.mubr.msk.bf16.mxu0 %vm2990_vm3, %v2987_v7 }
 0x67a   : > { %v788_v54 = vpop.f32.mrb[4].mxu0 }
 0x67b   : > { %v2692_v55 = vpop.f32.mrb[5].mxu0 }
 0x67c   : > { %v791_v56 = vpop.f32.mrb[6].mxu0  ;;  %v2429_v55 = vld [vmem:[%s3526_s3 + $0xc] ss:$0 sm:$0xff] }
 0x67d   : > { %v2693_v58 = vpop.f32.mrb[7].mxu0 }
 0x67e   : > { %v2430_v58 = vld [vmem:[%s3526_s3 + $0xd] ss:$0 sm:$0xff] }
 0x682   : > { %v850_v61 = vpop.f32.mrb[8].mxu0 }
 0x683   : > { %v851_v62 = vadd.f32 %v2403_v60, %v850_v61  ;;  %v2700_v63 = vpop.f32.mrb[9].mxu0 }
 0x684   : > { %v853_v0 = vpop.f32.mrb[10].mxu0  ;;  %v2921_v63 = vld [vmem:[%s3530_s7] sm:$0xff]  }
 0x685   : > { %v980_v1 = vpack.c.bf16 %v851_v62, %v851_v62  ;;  %v2701_v2 = vpop.f32.mrb[11].mxu0  ;;  %v2922_v0 = vld [vmem:[%s3530_s7 + $0x8] sm:$0xff]  }
 0x686   : > { %v2924_v2 = vld [vmem:[%s3530_s7 + $0x18] sm:$0xff]  }
 0x687   : > { %2721 = vmatmul.mubr.msk.bf16.vlgmr.msra.gmra.mrb[20].mxu1 %vm678_vm9, %v980_v1  ;;  %v2923_v1 = vld [vmem:[%s3530_s7 + $0x10] sm:$0xff]  }
 0x688   : > { %2734 = vmatprep.mubr.msk.bf16.mxu1 %vm2990_vm3, %v2987_v7  ;;  %2731 = vmatpush3.bf16.msra.mxu1 %v2917_v28 }
 0x689   : > { %2732 = vmatprep.subr.bf16.mxu1 %v2987_v7 }
 0x68a   : > { %v974_v3 = vpop.f32.mrb[12].mxu0 }
 0x68b   : > { %v975_v4 = vadd.f32 %v2419_v59, %v974_v3  ;;  %v2716_v5 = vpop.f32.mrb[13].mxu0  ;;  %v2431_v59 = vld [vmem:[%s3526_s3 + $0xa] ss:$0 sm:$0xff] }
 0x68c   : > { %v977_v6 = vpop.f32.mrb[14].mxu0  ;;  %2733 = vmatpush3.bf16.msra.mxu1 %v2918_v29  ;;  %v2925_v29 = vld [vmem:[%s3527_s4 + $0x60] sm:$0xff]  }
 0x68d   : > { %v1042_v8 = vpack.c.bf16 %v975_v4, %v975_v4  ;;  %v2717_v9 = vpop.f32.mrb[15].mxu0  ;;  %2746 = vmatprep.subr.bf16.mxu1 %v2987_v7 }
 0x68f   : > { %v1047_v10 = vsel %vm750_vm10, %v1042_v8, 0 }
 0x690   : > { %2725 = vmatpush3.bf16.msra.mxu0 %v1047_v10 }
 0x691   : > { %2738 = vmatprep.subr.bf16.mxu0 %v2987_v7 }
 0x75a   : > { %v1022_v11 = vpop.f32.mrb[20].mxu1 }
 0x75b   : > { %v1028_v12 = vmul.f32 0.25, %v1022_v11  ;;  %v2722_v13 = vpop.f32.mrb[21].mxu1 }
 0x75c   : > { %v1025_v14 = vpop.f32.mrb[22].mxu1 }
 0x75d   : > { %v2723_v15 = vpop.f32.mrb[23].mxu1  ;;  %v1029_v16 = vadd.f32 %v3193_v25, %v1028_v12 }
 0x75e   : > { %v2435_v15 = vld [vmem:[%s3526_s3 + $0xb] ss:$0 sm:$0xff] }
 0x75f   : > { %v1030_v17 = vsel %vm733_vm11, %v1029_v16, -inf }
 0x760   : > { %1031 = vmax.xlane.f32.xlu1 %v1030_v17 }
 0x7ed   : > { %v1032_v18 = vpop.xlane.xlu1 %1031 }
 0x7ee   : > { %v1033_v19 = vsub.f32 %v1029_v16, %v1032_v18 }
 0x7f0   : > { %v1034_v20 = vmul.f32 1.442695, %v1033_v19 }
 0x7f2   : > { %2953 = vpow2.f32 %v1034_v20 }
 0x7fc   : > { %v2954_v21 = vpop.eup %2953 }
 0x7fd   : > { %v1036_v22 = vsel %vm733_vm11, %v2954_v21, 0.0 }
 0x7fe   : > { %1037 = vadd.xlane.f32.xlu1 %v1036_v22 }
 0x88b   : > { %v1038_v23 = vpop.xlane.xlu1 %1037 }
 0x88c   : > { %2955 = vrcp.f32 %v1038_v23 }
 0x896   : > { %v2956_v24 = vpop.eup %2955 }
 0x897   : > { %v1040_v26 = vmul.f32 %v2956_v24, %v2954_v21 }
 0x899   : > { %v1041_v27 = vpack.c.bf16 %v1040_v26, %v1040_v26 }
 0x89b   : > { %2727 = vmatmul.mubr.msk.bf16.vlgmr.msra.gmra.mrb[16].mxu0 %vm733_vm11, %v1041_v27 }
 0x89c   : > { %2742 = vmatprep.mubr.msk.bf16.mxu0 %vm2990_vm3, %v2987_v7  ;;  %2739 = vmatpush3.bf16.msra.mxu0 %v2919_v50 }
 0x89d   : > { %2740 = vmatprep.subr.bf16.mxu0 %v2987_v7 }
 0x96e   : > { %v1083_v30 = vpop.f32.mrb[16].mxu0 }
 0x96f   : > { %1090 = vrot.lane.b32.xlu1 %v1083_v30, %s2991_s17  ;;  %v2728_v31 = vpop.f32.mrb[17].mxu0  ;;  %v2926_v30 = vld [vmem:[%s3527_s4 + $0x80] sm:$0xff]  }
 0x970   : > { %v1086_v32 = vpop.f32.mrb[18].mxu0  ;;  %v2927_v31 = vld [vmem:[%s3527_s4 + $0x68] sm:$0xff]  }
 0x971   : > { %v2729_v33 = vpop.f32.mrb[19].mxu0  ;;  %v2928_v32 = vld [vmem:[%s3527_s4 + $0x88] sm:$0xff]  }
 0x9e1   : > { %v1091_v34 = vpop.permute.xlu1 %1090 }
 0x9e2   : > { %v1093_v35 = vsel %vm678_vm9, %v788_v54, %v1091_v34 }
 0x9e3   : > { %v1094_v36 = vpack.c.bf16 %v1093_v35, %v1093_v35 }
 0x9e5   : > { %2735 = vmatmul.mubr.msk.bf16.vlgmr.msra.gmra.mrb[24].mxu1 %vm463_vm8, %v1094_v36 }
 0x9e6   : > { %2754 = vmatprep.mubr.msk.bf16.mxu1 %vm2990_vm3, %v2987_v7  ;;  %2747 = vmatpush3.bf16.msra.mxu1 %v2921_v63 }
 0x9e7   : > { %2748 = vmatprep.subr.bf16.mxu1 %v2987_v7 }
 0x9ea   : > { %2749 = vmatpush3.bf16.msra.mxu1 %v2922_v0 }
 0x9eb   : > { %2750 = vmatprep.subr.bf16.mxu1 %v2987_v7 }
 0x9ee   : > { %2751 = vmatpush3.bf16.msra.mxu1 %v2923_v1  ;;  %v2447_v1 = vld [vmem:[%s3526_s3 + $0x10] ss:$0 sm:$0xff] }
 0x9ef   : > { %2752 = vmatprep.subr.bf16.mxu1 %v2987_v7 }
 0x9f2   : > { %2753 = vmatpush3.bf16.msra.mxu1 %v2924_v2 }
 0x9f3   : > { %2774 = vmatprep.subr.bf16.mxu1 %v2987_v7 }
 0xab8   : > { %v1153_v38 = vpop.f32.mrb[24].mxu1 }
 0xab9   : > { %v1154_v39 = vadd.f32 %v2425_v37, %v1153_v38  ;;  %v2736_v40 = vpop.f32.mrb[25].mxu1  ;;  %v2441_v37 = vld [vmem:[%s3526_s3 + $0xe] ss:$0 sm:$0xff] }
 0xaba   : > { %v1156_v41 = vpop.f32.mrb[26].mxu1 }
 0xabb   : > { %v2737_v42 = vpop.f32.mrb[27].mxu1  ;;  %v1159_v43 = vadd.f32 %v1154_v39, %v3127_v57  ;;  %v2920_v57 = vld [vmem:[%s3529_s6 + $0x8] sm:$0xff]  }
 0xabc   : > { %2741 = vmatpush3.bf16.msra.mxu0 %v2920_v57  ;;  %v2442_v39 = vld [vmem:[%s3526_s3 + $0xf] ss:$0 sm:$0xff]  ;;  %v2929_v42 = vld [vmem:[%s3527_s4 + $0x70] sm:$0xff]  }
 0xabd   : > { %v1162_v44 = vsel %vm463_vm8, %v1159_v43, 0.0  ;;  %2758 = vmatprep.subr.bf16.mxu0 %v2987_v7 }
 0xabe   : > { %1163 = vadd.xlane.f32.xlu1 %v1162_v44  ;;  %v2930_v44 = vld [vmem:[%s3527_s4 + $0x78] sm:$0xff]  }
 0xb4b   : > { %v1164_v45 = vpop.xlane.xlu1 %1163 }
 0xb4c   : > { %v1165_v46 = vmul.f32 0.03125, %v1164_v45  ;;  %v2463_v45 = vld [vmem:[%s3526_s3 + $0x12] ss:$0 sm:$0xff] }
 0xb4e   : > { %v1166_v47 = vsub.f32 %v1159_v43, %v1165_v46 }
 0xb50   : > { %v1167_v48 = vmul.f32 %v1166_v47, %v1166_v47 }
 0xb52   : > { %v1168_v49 = vsel %vm463_vm8, %v1167_v48, 0.0 }
 0xb53   : > { %1169 = vadd.xlane.f32.xlu0 %v1168_v49 }
 0xbe0   : > { %v1170_v51 = vpop.xlane.xlu0 %1169 }
 0xbe1   : > { %v1171_v52 = vmul.f32 0.03125, %v1170_v51 }
 0xbe3   : > { %v1172_v53 = vadd.f32 1e-12, %v1171_v52 }
 0xbe5   : > { %2957 = vrsqrt.f32 %v1172_v53 }
 0xbef   : > { %v2958_v54 = vpop.eup %2957 }
 0xbf0   : > { %v1174_v56 = vmul.f32 %v2958_v54, %v1166_v47 }
 0xbf2   : > { %v1179_v60 = vmul.f32 %v2429_v55, %v1174_v56  ;;  %v2455_v56 = vld [vmem:[%s3526_s3 + $0x11] ss:$0 sm:$0xff] }
 0xbf4   : > { %v1184_v61 = vadd.f32 %v2430_v58, %v1179_v60 }
 0xbf6   : > { %v1185_v62 = vpack.c.bf16 %v1184_v61, %v1184_v61 }
 0xbf8   : > { %2743 = vmatmul.mubr.msk.bf16.vlgmr.msra.gmra.mrb[20].mxu0 %vm463_vm8, %v1185_v62 }
 0xbf9   : > { %2762 = vmatprep.mubr.msk.bf16.mxu0 %vm2990_vm3, %v2987_v7  ;;  %2759 = vmatpush3.bf16.msra.mxu0 %v2925_v29 }
 0xbfa   : > { %2760 = vmatprep.subr.bf16.mxu0 %v2987_v7 }
 0xbfd   : > { %2761 = vmatpush3.bf16.msra.mxu0 %v2927_v31 }
 0xbfe   : > { %2766 = vmatprep.subr.bf16.mxu0 %v2987_v7 }
 0xccb   : > { %v1244_v3 = vpop.f32.mrb[20].mxu0 }
 0xccc   : > { %v1245_v4 = vadd.f32 %v2431_v59, %v1244_v3  ;;  %v2744_v5 = vpop.f32.mrb[21].mxu0  ;;  %v2931_v3 = vld [vmem:[%s3527_s4 + $0x90] sm:$0xff]  }
 0xccd   : > { %v1247_v6 = vpop.f32.mrb[22].mxu0  ;;  %v2932_v5 = vld [vmem:[%s3527_s4 + $0x98] sm:$0xff]  }
 0xcce   : > { %v1252_v8 = vmul.f32 0.70710677, %v1245_v4  ;;  %v2745_v9 = vpop.f32.mrb[23].mxu0  ;;  %v1250_v11 = vmul.f32 0.5, %v1245_v4  ;;  %v2933_v6 = vld [vmem:[%s3527_s4 + $0xb0] sm:$0xff]  }
 0xcd0   : > { %2959 = verf.f32 %v1252_v8  ;;  %v2934_v8 = vld [vmem:[%s3527_s4 + $0xb8] sm:$0xff]  }
 0xcda   : > { %v2960_v10 = vpop.eup %2959 }
 0xcdb   : > { %v1254_v12 = vadd.f32 1.0, %v2960_v10 }
 0xcdd   : > { %v1255_v13 = vmul.f32 %v1254_v12, %v1250_v11 }
 0xcdf   : > { %v1256_v14 = vpack.c.bf16 %v1255_v13, %v1255_v13 }
 0xce1   : > { %2755 = vmatmul.mubr.msk.bf16.vlgmr.msra.gmra.mrb[28].mxu1 %vm1294_vm12, %v1256_v14 }
 0xce2   : > { %2778 = vmatprep.mubr.msk.bf16.mxu1 %vm2990_vm3, %v2987_v7  ;;  %2775 = vmatpush3.bf16.msra.mxu1 %v2926_v30 }
 0xce3   : > { %2776 = vmatprep.subr.bf16.mxu1 %v2987_v7 }
 0xce6   : > { %2777 = vmatpush3.bf16.msra.mxu1 %v2928_v32 }
 0xce7   : > { %2788 = vmatprep.subr.bf16.mxu1 %v2987_v7 }
 0xdb4   : > { %v1332_v16 = vpop.f32.mrb[28].mxu1 }
 0xdb5   : > { %v1333_v17 = vadd.f32 %v2435_v15, %v1332_v16  ;;  %v2756_v18 = vpop.f32.mrb[29].mxu1 }
 0xdb6   : > { %v1335_v19 = vpop.f32.mrb[30].mxu1 }
 0xdb7   : > { %v2757_v20 = vpop.f32.mrb[31].mxu1  ;;  %v1338_v21 = vadd.f32 %v1333_v17, %v1184_v61 }
 0xdb8   : > { %v2489_v20 = vld [vmem:[%s3526_s3 + $0x15] ss:$0 sm:$0xff] }
 0xdb9   : > { %v1341_v22 = vsel %vm463_vm8, %v1338_v21, 0.0 }
 0xdba   : > { %1342 = vadd.xlane.f32.xlu0 %v1341_v22 }
 0xe47   : > { %v1343_v23 = vpop.xlane.xlu0 %1342 }
 0xe48   : > { %v1344_v24 = vmul.f32 0.03125, %v1343_v23 }
 0xe4a   : > { %v1345_v26 = vsub.f32 %v1338_v21, %v1344_v24 }
 0xe4c   : > { %v1346_v27 = vmul.f32 %v1345_v26, %v1345_v26 }
 0xe4e   : > { %v1347_v28 = vsel %vm463_vm8, %v1346_v27, 0.0 }
 0xe4f   : > { %1348 = vadd.xlane.f32.xlu0 %v1347_v28 }
 0xedc   : > { %v1349_v33 = vpop.xlane.xlu0 %1348 }
 0xedd   : > { %v1350_v34 = vmul.f32 0.03125, %v1349_v33 }
 0xedf   : > { %v1351_v35 = vadd.f32 1e-12, %v1350_v34 }
 0xee1   : > { %2961 = vrsqrt.f32 %v1351_v35 }
 0xeeb   : > { %v2962_v36 = vpop.eup %2961 }
 0xeec   : > { %v1353_v38 = vmul.f32 %v2962_v36, %v1345_v26 }
 0xeee   : > { %v1358_v40 = vmul.f32 %v2441_v37, %v1353_v38  ;;  %v2935_v37 = vld [vmem:[%s3527_s4 + $0xa0] sm:$0xff]  }
 0xef0   : > { %v3332_v41 = vadd.f32 %v2442_v39, %v1358_v40  ;;  %v2936_v39 = vld [vmem:[%s3527_s4 + $0xa8] sm:$0xff]  }
 0xef2   : > { %v3339_v43 = vpack.c.bf16 %v3332_v41, %v3332_v41 }
 0xef4   : > { %2763 = vmatmul.mubr.msk.bf16.vlgmr.msra.gmra.mrb[24].mxu0 %vm463_vm8, %v3339_v43  ;;  %2779 = vmatmul.mubr.msk.bf16.vlgmr.msra.gmra.mrb[32].mxu1 %vm463_vm8, %v3339_v43 }
 0xef5   : > { %2767 = vmatpush3.bf16.msra.mxu0 %v2929_v42  ;;  %2770 = vmatprep.mubr.msk.bf16.mxu0 %vm2990_vm3, %v2987_v7 }
 0xef6   : > { %2768 = vmatprep.subr.bf16.mxu0 %v2987_v7  ;;  %2790 = vmatprep.mubr.msk.bf16.mxu1 %vm2990_vm3, %v2987_v7 }
 0xef9   : > { %2769 = vmatpush3.bf16.msra.mxu0 %v2930_v44 }
 0xefa   : > { %2782 = vmatprep.subr.bf16.mxu0 %v2987_v7 }
 0xefc   : > { %2771 = vmatmul.mubr.msk.bf16.vlgmr.msra.gmra.mrb[28].mxu0 %vm463_vm8, %v3339_v43 }
 0xefd   : > { %2784 = vmatprep.mubr.msk.bf16.mxu0 %vm2990_vm3, %v2987_v7 }
 0xfc7   : > { %v1424_v46 = vpop.f32.mrb[24].mxu0  ;;  %v1548_v47 = vpop.f32.mrb[32].mxu1 }
 0xfc8   : > { %v1549_v48 = vadd.f32 %v2463_v45, %v1548_v47  ;;  %v2764_v49 = vpop.f32.mrb[25].mxu0  ;;  %v2780_v50 = vpop.f32.mrb[33].mxu1  ;;  %v1425_v59 = vadd.f32 %v2447_v1, %v1424_v46  ;;  %v2481_v46 = vld [vmem:[%s3526_s3 + $0x14] ss:$0 sm:$0xff] }
 0xfc9   : > { %v1427_v57 = vpop.f32.mrb[26].mxu0  ;;  %v1551_v51 = vpop.f32.mrb[34].mxu1 }
 0xfca   : > { %v1616_v52 = vpack.c.bf16 %v1549_v48, %v1549_v48  ;;  %v2765_v53 = vpop.f32.mrb[27].mxu0  ;;  %v2781_v54 = vpop.f32.mrb[35].mxu1  ;;  %v1554_v4 = vpack.c.bf16 %v1425_v59, %v1425_v59 }
 0xfcc   : > { %v1621_v55 = vsel %vm750_vm10, %v1616_v52, 0 }
 0xfcd   : > { %2789 = vmatpush3.bf16.msra.mxu1 %v1621_v55 }
 0xfce   : > { %2802 = vmatprep.subr.bf16.mxu1 %v2987_v7 }
 0xfcf   : > { %v1486_v58 = vpop.f32.mrb[28].mxu0 }
 0xfd0   : > { %v1487_v60 = vadd.f32 %v2455_v56, %v1486_v58  ;;  %v2772_v61 = vpop.f32.mrb[29].mxu0 }
 0xfd1   : > { %v1489_v62 = vpop.f32.mrb[30].mxu0 }
 0xfd2   : > { %v1555_v63 = vpack.c.bf16 %v1487_v60, %v1487_v60  ;;  %v2773_v0 = vpop.f32.mrb[31].mxu0 }
 0xfd4   : > { %v1560_v2 = vsel %vm678_vm9, %v1555_v63, 0 }
 0xfd5   : > { %2783 = vmatpush3.bf16.xpose.msra.mxu0 %v1560_v2 }
 0xfd6   : > { %2794 = vmatprep.subr.bf16.mxu0 %v2987_v7 }
 0xfdc   : > { %2785 = vmatmul.mubr.msk.bf16.vlgmr.msra.gmra.mrb[32].mxu0 %vm678_vm9, %v1554_v4 }
 0xfdd   : > { %2795 = vmatpush3.bf16.msra.mxu0 %v2931_v3  ;;  %2798 = vmatprep.mubr.msk.bf16.mxu0 %vm2990_vm3, %v2987_v7 }
 0xfde   : > { %2796 = vmatprep.subr.bf16.mxu0 %v2987_v7 }
 0xfe1   : > { %2797 = vmatpush3.bf16.msra.mxu0 %v2932_v5 }
 0xfe2   : > { %2810 = vmatprep.subr.bf16.mxu0 %v2987_v7 }
 0xfe4   : > { %2799 = vmatmul.mubr.msk.bf16.vlgmr.msra.gmra.mrb[36].mxu0 %vm463_vm8, %v3339_v43 }
 0xfe5   : > { %2811 = vmatpush3.bf16.msra.mxu0 %v2933_v6  ;;  %2814 = vmatprep.mubr.msk.bf16.mxu0 %vm2990_vm3, %v2987_v7 }
 0xfe6   : > { %2812 = vmatprep.subr.bf16.mxu0 %v2987_v7 }
 0xfe9   : > { %2813 = vmatpush3.bf16.msra.mxu0 %v2934_v8 }
 0xfea   : > { %2824 = vmatprep.subr.bf16.mxu0 %v2987_v7 }
 0xfec   : > { %2815 = vmatmul.mubr.msk.bf16.vlgmr.msra.gmra.mrb[40].mxu0 %vm463_vm8, %v3339_v43 }
 0xfed   : > { %2826 = vmatprep.mubr.msk.bf16.mxu0 %vm2990_vm3, %v2987_v7 }
0x10af   : > { %v1596_v9 = vpop.f32.mrb[32].mxu0 }
0x10b0   : > { %v1602_v10 = vmul.f32 0.25, %v1596_v9  ;;  %v2786_v11 = vpop.f32.mrb[33].mxu0  ;;  %v2938_v9 = vld [vmem:[%s3528_s5 + $0x18] sm:$0xff]  }
0x10b1   : > { %v1599_v12 = vpop.f32.mrb[34].mxu0 }
0x10b2   : > { %v2787_v13 = vpop.f32.mrb[35].mxu0  ;;  %v1603_v14 = vadd.f32 %v3193_v25, %v1602_v10 }
0x10b4   : > { %v1604_v15 = vsel %vm733_vm11, %v1603_v14, -inf }
0x10b5   : > { %1605 = vmax.xlane.f32.xlu0 %v1604_v15 }
0x10b7   : > { %v1719_v16 = vpop.f32.mrb[36].mxu0 }
0x10b8   : > { %v2800_v17 = vpop.f32.mrb[37].mxu0 }
0x10b9   : > { %v1722_v18 = vpop.f32.mrb[38].mxu0  ;;  %v2499_v17 = vld [vmem:[%s3526_s3 + $0x16] ss:$0 sm:$0xff] }
0x10ba   : > { %v2801_v19 = vpop.f32.mrb[39].mxu0 }
0x10bf   : > { %v1843_v21 = vpop.f32.mrb[40].mxu0 }
0x10c0   : > { %v1844_v22 = vadd.f32 %v2489_v20, %v1843_v21  ;;  %v2816_v23 = vpop.f32.mrb[41].mxu0 }
0x10c1   : > { %v1846_v24 = vpop.f32.mrb[42].mxu0 }
0x10c2   : > { %v1911_v26 = vpack.c.bf16 %v1844_v22, %v1844_v22  ;;  %v2817_v27 = vpop.f32.mrb[43].mxu0 }
0x10c4   : > { %v1916_v28 = vsel %vm750_vm10, %v1911_v26, 0 }
0x10c5   : > { %2825 = vmatpush3.bf16.msra.mxu0 %v1916_v28 }
0x10c6   : > { %2838 = vmatprep.subr.bf16.mxu0 %v2987_v7 }
0x1142   : > { %v1606_v29 = vpop.xlane.xlu0 %1605 }
0x1143   : > { %v1607_v30 = vsub.f32 %v1603_v14, %v1606_v29 }
0x1145   : > { %v1608_v31 = vmul.f32 1.442695, %v1607_v30 }
0x1147   : > { %2963 = vpow2.f32 %v1608_v31  ;;  %v2939_v31 = vld [vmem:[%s3529_s6 + $0x10] sm:$0xff]  }
0x1151   : > { %v2964_v32 = vpop.eup %2963 }
0x1152   : > { %v1610_v33 = vsel %vm733_vm11, %v2964_v32, 0.0 }
0x1153   : > { %1611 = vadd.xlane.f32.xlu0 %v1610_v33 }
0x11e0   : > { %v1612_v34 = vpop.xlane.xlu0 %1611 }
0x11e1   : > { %2965 = vrcp.f32 %v1612_v34 }
0x11eb   : > { %v2966_v35 = vpop.eup %2965 }
0x11ec   : > { %v1614_v36 = vmul.f32 %v2966_v35, %v2964_v32 }
0x11ee   : > { %v1615_v38 = vpack.c.bf16 %v1614_v36, %v1614_v36  ;;  %v2503_v36 = vld [vmem:[%s3526_s3 + $0x19] ss:$0 sm:$0xff] }
0x11f0   : > { %2791 = vmatmul.mubr.msk.bf16.vlgmr.msra.gmra.mrb[36].mxu1 %vm733_vm11, %v1615_v38  ;;  %v2504_v38 = vld [vmem:[%s3526_s3 + $0x1a] ss:$0 sm:$0xff] }
0x11f1   : > { %2803 = vmatpush3.bf16.msra.mxu1 %v2935_v37  ;;  %2806 = vmatprep.mubr.msk.bf16.mxu1 %vm2990_vm3, %v2987_v7 }
0x11f2   : > { %2804 = vmatprep.subr.bf16.mxu1 %v2987_v7 }
0x11f5   : > { %2805 = vmatpush3.bf16.msra.mxu1 %v2936_v39 }
0x11f6   : > { %2818 = vmatprep.subr.bf16.mxu1 %v2987_v7 }
0x11f8   : > { %2807 = vmatmul.mubr.msk.bf16.vlgmr.msra.gmra.mrb[40].mxu1 %vm463_vm8, %v3339_v43  ;;  %v2473_v43 = vld [vmem:[%s3526_s3 + $0x13] ss:$0 sm:$0xff] }
0x11f9   : > { %2820 = vmatprep.mubr.msk.bf16.mxu1 %vm2990_vm3, %v2987_v7  ;;  %v1720_v53 = vadd.f32 %v2473_v43, %v1719_v16 }
0x11fb   : > { %v1849_v54 = vpack.c.bf16 %v1720_v53, %v1720_v53 }
0x12c3   : > { %v1657_v40 = vpop.f32.mrb[36].mxu1 }
0x12c4   : > { %v2792_v42 = vpop.f32.mrb[37].mxu1 }
0x12c5   : > { %v1660_v44 = vpop.f32.mrb[38].mxu1 }
0x12c6   : > { %v2793_v45 = vpop.f32.mrb[39].mxu1  ;;  %v2941_v44 = vld [vmem:[%s3530_s7 + $0x20] sm:$0xff]  }
0x12c7   : > { %v2942_v45 = vld [vmem:[%s3530_s7 + $0x28] sm:$0xff]  }
0x12cb   : > { %v1781_v47 = vpop.f32.mrb[40].mxu1 }
0x12cc   : > { %v1782_v48 = vadd.f32 %v2481_v46, %v1781_v47  ;;  %v2808_v49 = vpop.f32.mrb[41].mxu1  ;;  %v2943_v46 = vld [vmem:[%s3530_s7 + $0x30] sm:$0xff]   ;;  %v2944_v47 = vld [vmem:[%s3530_s7 + $0x38] sm:$0xff]  }
0x12cd   : > { %v1784_v50 = vpop.f32.mrb[42].mxu1 }
0x12ce   : > { %v1850_v57 = vpack.c.bf16 %v1782_v48, %v1782_v48  ;;  %v2809_v51 = vpop.f32.mrb[43].mxu1  ;;  %v2509_v48 = vld [vmem:[%s3526_s3 + $0x17] ss:$0 sm:$0xff] }
0x12d0   : > { %v1855_v52 = vsel %vm678_vm9, %v1850_v57, 0 }
0x12d1   : > { %2819 = vmatpush3.bf16.xpose.msra.mxu1 %v1855_v52 }
0x12d2   : > { %2830 = vmatprep.subr.bf16.mxu1 %v2987_v7 }
0x12d8   : > { %2821 = vmatmul.mubr.msk.bf16.vlgmr.msra.gmra.mrb[44].mxu1 %vm678_vm9, %v1849_v54 }
0x12d9   : > { %2834 = vmatprep.mubr.msk.bf16.mxu1 %vm2990_vm3, %v2987_v7 }
0x13ab   : > { %v1891_v55 = vpop.f32.mrb[44].mxu1 }
0x13ac   : > { %v1897_v56 = vmul.f32 0.25, %v1891_v55  ;;  %v2822_v58 = vpop.f32.mrb[45].mxu1 }
0x13ad   : > { %v1894_v60 = vpop.f32.mrb[46].mxu1 }
0x13ae   : > { %v2823_v61 = vpop.f32.mrb[47].mxu1  ;;  %v1898_v62 = vadd.f32 %v3193_v25, %v1897_v56  ;;  %v2937_v25 = vld [vmem:[%s3528_s5 + $0x10] sm:$0xff]   ;;  %v2521_v60 = vld [vmem:[%s3526_s3 + $0x18] ss:$0 sm:$0xff] }
0x13af   : > { %2831 = vmatpush3.bf16.msra.mxu1 %v2937_v25  ;;  %v2945_v25 = vld [vmem:[%s3531_s8] sm:$0xff]  }
0x13b0   : > { %v1899_v63 = vsel %vm733_vm11, %v1898_v62, -inf  ;;  %2832 = vmatprep.subr.bf16.mxu1 %v2987_v7 }
0x13b1   : > { %1900 = vmax.xlane.f32.xlu0 %v1899_v63 }
0x13b3   : > { %2833 = vmatpush3.bf16.msra.mxu1 %v2938_v9  ;;  %v2946_v9 = vld [vmem:[%s3531_s8 + $0x8] sm:$0xff]  }
0x13b4   : > { %2846 = vmatprep.subr.bf16.mxu1 %v2987_v7 }
0x143e   : > { %v1901_v0 = vpop.xlane.xlu0 %1900 }
0x143f   : > { %v1902_v1 = vsub.f32 %v1898_v62, %v1901_v0 }
0x1441   : > { %v1903_v2 = vmul.f32 1.442695, %v1902_v1 }
0x1443   : > { %2967 = vpow2.f32 %v1903_v2 }
0x144d   : > { %v2968_v59 = vpop.eup %2967 }
0x144e   : > { %v1905_v3 = vsel %vm733_vm11, %v2968_v59, 0.0 }
0x144f   : > { %1906 = vadd.xlane.f32.xlu0 %v1905_v3 }
0x14dc   : > { %v1907_v4 = vpop.xlane.xlu0 %1906 }
0x14dd   : > { %2969 = vrcp.f32 %v1907_v4 }
0x14e7   : > { %v2970_v5 = vpop.eup %2969 }
0x14e8   : > { %v1909_v6 = vmul.f32 %v2970_v5, %v2968_v59 }
0x14ea   : > { %v1910_v8 = vpack.c.bf16 %v1909_v6, %v1909_v6 }
0x14ec   : > { %2827 = vmatmul.mubr.msk.bf16.vlgmr.msra.gmra.mrb[44].mxu0 %vm733_vm11, %v1910_v8 }
0x14ed   : > { %2842 = vmatprep.mubr.msk.bf16.mxu0 %vm2990_vm3, %v2987_v7  ;;  %2839 = vmatpush3.bf16.msra.mxu0 %v2939_v31 }
0x14ee   : > { %2840 = vmatprep.subr.bf16.mxu0 %v2987_v7 }
0x15bf   : > { %v1952_v10 = vpop.f32.mrb[44].mxu0 }
0x15c0   : > { %1959 = vrot.lane.b32.xlu0 %v1952_v10, %s2991_s17  ;;  %v2828_v11 = vpop.f32.mrb[45].mxu0 }
0x15c1   : > { %v1955_v12 = vpop.f32.mrb[46].mxu0 }
0x15c2   : > { %v2829_v13 = vpop.f32.mrb[47].mxu0 }
0x1632   : > { %v1960_v14 = vpop.permute.xlu0 %1959 }
0x1633   : > { %v1962_v15 = vsel %vm678_vm9, %v1657_v40, %v1960_v14  ;;  %v2527_v14 = vld [vmem:[%s3526_s3 + $0x1b] ss:$0 sm:$0xff] }
0x1634   : > { %v1963_v16 = vpack.c.bf16 %v1962_v15, %v1962_v15 }
0x1636   : > { %2835 = vmatmul.mubr.msk.bf16.vlgmr.msra.gmra.mrb[48].mxu1 %vm463_vm8, %v1963_v16 }
0x1637   : > { %2854 = vmatprep.mubr.msk.bf16.mxu1 %vm2990_vm3, %v2987_v7  ;;  %2847 = vmatpush3.bf16.msra.mxu1 %v2941_v44 }
0x1638   : > { %2848 = vmatprep.subr.bf16.mxu1 %v2987_v7 }
0x163b   : > { %2849 = vmatpush3.bf16.msra.mxu1 %v2942_v45 }
0x163c   : > { %2850 = vmatprep.subr.bf16.mxu1 %v2987_v7 }
0x163f   : > { %2851 = vmatpush3.bf16.msra.mxu1 %v2943_v46 }
0x1640   : > { %2852 = vmatprep.subr.bf16.mxu1 %v2987_v7 }
0x1643   : > { %2853 = vmatpush3.bf16.msra.mxu1 %v2944_v47 }
0x1709   : > { %v2023_v18 = vpop.f32.mrb[48].mxu1 }
0x170a   : > { %v2024_v19 = vadd.f32 %v2499_v17, %v2023_v18  ;;  %v2836_v20 = vpop.f32.mrb[49].mxu1 }
0x170b   : > { %v2026_v21 = vpop.f32.mrb[50].mxu1 }
0x170c   : > { %v2837_v22 = vpop.f32.mrb[51].mxu1  ;;  %v2029_v23 = vadd.f32 %v2024_v19, %v3332_v41  ;;  %v2940_v41 = vld [vmem:[%s3529_s6 + $0x18] sm:$0xff]   ;;  %v2529_v19 = vld [vmem:[%s3526_s3 + $0x2] ss:$0 sm:$0xff] }
0x170d   : > { %2841 = vmatpush3.bf16.msra.mxu0 %v2940_v41 }
0x170e   : > { %v2032_v24 = vsel %vm463_vm8, %v2029_v23, 0.0  ;;  %2858 = vmatprep.subr.bf16.mxu0 %v2987_v7 }
0x170f   : > { %2033 = vadd.xlane.f32.xlu1 %v2032_v24 }
0x179c   : > { %v2034_v26 = vpop.xlane.xlu1 %2033 }
0x179d   : > { %v2035_v27 = vmul.f32 0.03125, %v2034_v26 }
0x179f   : > { %v2036_v28 = vsub.f32 %v2029_v23, %v2035_v27 }
0x17a1   : > { %v2037_v29 = vmul.f32 %v2036_v28, %v2036_v28 }
0x17a3   : > { %v2038_v30 = vsel %vm463_vm8, %v2037_v29, 0.0 }
0x17a4   : > { %2039 = vadd.xlane.f32.xlu1 %v2038_v30 }
0x1831   : > { %v2040_v32 = vpop.xlane.xlu1 %2039 }
0x1832   : > { %v2041_v33 = vmul.f32 0.03125, %v2040_v32 }
0x1834   : > { %v2042_v34 = vadd.f32 1e-12, %v2041_v33 }
0x1836   : > { %2971 = vrsqrt.f32 %v2042_v34 }
0x1840   : > { %v2972_v35 = vpop.eup %2971 }
0x1841   : > { %v2044_v37 = vmul.f32 %v2972_v35, %v2036_v28 }
0x1843   : > { %v2049_v39 = vmul.f32 %v2503_v36, %v2044_v37 }
0x1845   : > { %v2054_v40 = vadd.f32 %v2504_v38, %v2049_v39 }
0x1847   : > { %v2055_v42 = vpack.c.bf16 %v2054_v40, %v2054_v40 }
0x1849   : > { %2843 = vmatmul.mubr.msk.bf16.vlgmr.msra.gmra.mrb[48].mxu0 %vm463_vm8, %v2055_v42 }
0x184a   : > { %2862 = vmatprep.mubr.msk.bf16.mxu0 %vm2990_vm3, %v2987_v7  ;;  %2859 = vmatpush3.bf16.msra.mxu0 %v2945_v25 }
0x184b   : > { %2860 = vmatprep.subr.bf16.mxu0 %v2987_v7  ;;  %v2528_v7 = vld [vmem:[%s3526_s3 + $0x1c] ss:$0 sm:$0xff] }
0x184e   : > { %2861 = vmatpush3.bf16.msra.mxu0 %v2946_v9 }
0x191c   : > { %v2115_v49 = vpop.f32.mrb[48].mxu0 }
0x191d   : > { %v2116_v50 = vadd.f32 %v2509_v48, %v2115_v49  ;;  %v2844_v57 = vpop.f32.mrb[49].mxu0 }
0x191e   : > { %v2118_v51 = vpop.f32.mrb[50].mxu0 }
0x191f   : > { %v2122_v43 = vmul.f32 0.70710677, %v2116_v50  ;;  %v2845_v52 = vpop.f32.mrb[51].mxu0  ;;  %v2121_v54 = vmul.f32 0.5, %v2116_v50 }
0x1921   : > { %2973 = verf.f32 %v2122_v43 }
0x192b   : > { %v2974_v53 = vpop.eup %2973 }
0x192c   : > { %v2124_v55 = vadd.f32 1.0, %v2974_v53 }
0x192e   : > { %v2125_v56 = vmul.f32 %v2124_v55, %v2121_v54 }
0x1930   : > { %v2126_v58 = vpack.c.bf16 %v2125_v56, %v2125_v56 }
0x1932   : > { %2855 = vmatmul.mubr.msk.bf16.vlgmr.msra.gmra.mrb[52].mxu1 %vm1294_vm12, %v2126_v58 }
0x1a05   : > { %v2202_v61 = vpop.f32.mrb[52].mxu1 }
0x1a06   : > { %v2203_v62 = vadd.f32 %v2521_v60, %v2202_v61  ;;  %v2856_v63 = vpop.f32.mrb[53].mxu1 }
0x1a07   : > { %v2205_v0 = vpop.f32.mrb[54].mxu1 }
0x1a08   : > { %v2857_v1 = vpop.f32.mrb[55].mxu1  ;;  %v2208_v2 = vadd.f32 %v2203_v62, %v2054_v40 }
0x1a0a   : > { %v2211_v59 = vsel %vm463_vm8, %v2208_v2, 0.0 }
0x1a0b   : > { %2212 = vadd.xlane.f32.xlu1 %v2211_v59 }
0x1a98   : > { %v2213_v3 = vpop.xlane.xlu1 %2212 }
0x1a99   : > { %v2214_v4 = vmul.f32 0.03125, %v2213_v3 }
0x1a9b   : > { %v2215_v5 = vsub.f32 %v2208_v2, %v2214_v4 }
0x1a9d   : > { %v2216_v6 = vmul.f32 %v2215_v5, %v2215_v5 }
0x1a9f   : > { %v2217_v8 = vsel %vm463_vm8, %v2216_v6, 0.0 }
0x1aa0   : > { %2218 = vadd.xlane.f32.xlu1 %v2217_v8 }
0x1b2d   : > { %v2219_v10 = vpop.xlane.xlu1 %2218 }
0x1b2e   : > { %v2220_v11 = vmul.f32 0.03125, %v2219_v10 }
0x1b30   : > { %v2221_v12 = vadd.f32 1e-12, %v2220_v11 }
0x1b32   : > { %2975 = vrsqrt.f32 %v2221_v12 }
0x1b3c   : > { %v2976_v13 = vpop.eup %2975 }
0x1b3d   : > { %v2223_v15 = vmul.f32 %v2976_v13, %v2215_v5 }
0x1b3f   : > { %v2228_v16 = vmul.f32 %v2527_v14, %v2223_v15 }
0x1b41   : > { %v2233_v17 = vadd.f32 %v2528_v7, %v2228_v16 }
0x1b43   : > { %v2234_v18 = vpack.c.bf16 %v2233_v17, %v2233_v17 }
0x1b45   : > { %2863 = vmatmul.mubr.msk.bf16.vlgmr.msra.gmra.mrb[52].mxu0 %vm463_vm8, %v2234_v18 }
0x1c18   : > { %v2293_v20 = vpop.f32.mrb[52].mxu0 }
0x1c19   : > { %v2294_v21 = vadd.f32 %v2529_v19, %v2293_v20  ;;  %v2864_v22 = vpop.f32.mrb[53].mxu0 }
0x1c1a   : > { %v2296_v23 = vpop.f32.mrb[54].mxu0 }
0x1c1b   : > { %2299 = vst [vmem:[%s341_s13] sm:$0xff] %v2294_v21  ;;  %v2865_v24 = vpop.f32.mrb[55].mxu0 }
0x1c1c PF: > { %s19_s30 = sadd.s32 1, %s2983_s30  }
0x1c1d   : > { %p16_p4 = scmp.ge.s32.totalorder %s19_s30, 4  }
0x1c1f   :  { %18 = sbr.rel (!%p16_p4) target bundleno = 1 (0x1), region = 103 }

</bundles_post_ra>
